<compile_context>
chip_gen: v7x
topology: tpu7x:2x2x1
jax: 0.10.0
libtpu: 0.0.40
codegen_flags: <defaults>
</compile_context>

<pallas_src>
import math
import jax
import jax.numpy as jnp
from jax.experimental import pallas as pl
from jax.experimental.pallas import tpu as pltpu

# ----------------------- small synthetic config -----------------------
VOCAB    = 128
HIDDEN   = 32
N_HEADS  = 2
HEAD_DIM = HIDDEN // N_HEADS
FFN      = 64
N_LAYERS = 2
SEQ      = 8
BATCH    = 2
LN_EPS   = 1e-12
HEAD_PAD = 128          # lane-dense padding of the final (H -> ... -> 1) head output


# ----------------------- in-kernel math helpers -----------------------
def _erf(x):
    # Abramowitz & Stegun 7.1.26 rational approximation (|err| < 1.5e-7),
    # built only from exp/mul/add so it always lowers on the TPU VPU/EUP.
    a1, a2, a3, a4, a5 = (0.254829592, -0.284496736, 1.421413741,
                          -1.453152027, 1.061405429)
    p = 0.3275911
    s = jnp.where(x >= 0.0, 1.0, -1.0)
    ax = jnp.abs(x)
    t = 1.0 / (1.0 + p * ax)
    y = 1.0 - (((((a5 * t + a4) * t) + a3) * t + a2) * t + a1) * t * jnp.exp(-ax * ax)
    return s * y


def _gelu(x):
    # exact (erf-form) GELU, matching torch.nn.GELU() default
    return 0.5 * x * (1.0 + _erf(x * (1.0 / math.sqrt(2.0))))


def _layernorm(x, g, b):
    mu = jnp.mean(x, axis=-1, keepdims=True)
    var = jnp.mean((x - mu) ** 2, axis=-1, keepdims=True)
    return (x - mu) * jax.lax.rsqrt(var + LN_EPS) * g + b


def _split_heads(m2d):
    # [S, H] -> [N_HEADS, S, HEAD_DIM]  (head becomes the leading batch axis)
    return jnp.stack(
        [m2d[:, h * HEAD_DIM:(h + 1) * HEAD_DIM] for h in range(N_HEADS)], axis=0)


# ----------------------- fused whole-forward kernel -----------------------
def fused_forward_kernel(x_ref, mask_k_ref, mask_q_ref,
                         wqkv_ref, bqkv_ref, wo_ref, w1_ref, b1_ref, w2_ref, small_ref,
                         pw1_ref, pb1_ref, pw2_ref, pb2_ref, pw3_ref, pb3_ref,
                         out_ref):
    _, S, H = x_ref.shape
    h = x_ref[...].reshape(S, H)                      # activation stays VMEM/vreg-resident
    mask_k = mask_k_ref[...]                          # [1, 1, S]  (key-side mask)
    attn_bias = (1.0 - mask_k) * jnp.float32(-1e9)    # additive bias, broadcast over (head, q)
    scale = jnp.float32(1.0 / math.sqrt(HEAD_DIM))

    # ---- encoder layers, unrolled (N_LAYERS small & static) ----
    for l in range(N_LAYERS):
        wqkv = wqkv_ref[l]                            # [H, 3H]  (bf16)
        bqkv = bqkv_ref[l]                            # [1, 3H]  (f32)
        wo   = wo_ref[l]                              # [H, H]   (bf16)
        w1   = w1_ref[l]                              # [H, FFN] (bf16)
        b1   = b1_ref[l]                              # [1, FFN] (f32)
        w2   = w2_ref[l]                              # [FFN, H] (bf16)
        sm   = small_ref[l]                           # [6, H]   packed: bo, ln1g, ln1b, b2, ln2g, ln2b
        bo, ln1g, ln1b = sm[0:1], sm[1:2], sm[2:3]
        b2, ln2g, ln2b = sm[3:4], sm[4:5], sm[5:6]

        # fused QKV projection: one MXU push with a 3H-wide output
        qkv = jnp.dot(h.astype(jnp.bfloat16), wqkv,
                      preferred_element_type=jnp.float32) + bqkv       # [S, 3H]

        q = _split_heads(qkv[:, 0 * H:1 * H])         # [NH, S, HD]
        k = _split_heads(qkv[:, 1 * H:2 * H])
        v = _split_heads(qkv[:, 2 * H:3 * H])

        # attention batched over heads (single einsum pair, single softmax)
        s = jnp.einsum('hqd,hkd->hqk', q, k,
                       preferred_element_type=jnp.float32) * scale + attn_bias
        s = s - jnp.max(s, axis=-1, keepdims=True)    # stable softmax
        p = jnp.exp(s)
        p = p * pl.reciprocal(jnp.sum(p, axis=-1, keepdims=True), approx=True)
        ctx = jnp.einsum('hqk,hkd->hqd', p, v,
                         preferred_element_type=jnp.float32)           # [NH, S, HD]
        ctx = jnp.concatenate([ctx[i] for i in range(N_HEADS)], axis=-1)  # [S, H]

        attn = jnp.dot(ctx.astype(jnp.bfloat16), wo,
                       preferred_element_type=jnp.float32) + bo
        h1 = _layernorm(h + attn, ln1g, ln1b)

        ff = _gelu(jnp.dot(h1.astype(jnp.bfloat16), w1,
                           preferred_element_type=jnp.float32) + b1)
        ff = jnp.dot(ff.astype(jnp.bfloat16), w2,
                     preferred_element_type=jnp.float32) + b2
        h = _layernorm(h1 + ff, ln2g, ln2b)

    # ---- masked max-pool over sequence (finite sentinel instead of -inf) ----
    keep = mask_q_ref[...].reshape(S, 1)              # [S, 1] query-side mask
    pooled = jnp.max(jnp.where(keep > 0.0, h, jnp.float32(-1e30)),
                     axis=0, keepdims=True)           # [1, H]

    # ---- MLP head: Linear(H,512)->GELU->(Dropout=id)->Linear(512,256)->GELU->Linear(256,1)->Sigmoid
    z = _gelu(jnp.dot(pooled.astype(jnp.bfloat16), pw1_ref[...],
                      preferred_element_type=jnp.float32) + pb1_ref[...])
    z = _gelu(jnp.dot(z.astype(jnp.bfloat16), pw2_ref[...],
                      preferred_element_type=jnp.float32) + pb2_ref[...])
    z = jnp.dot(z.astype(jnp.bfloat16), pw3_ref[...],
                preferred_element_type=jnp.float32) + pb3_ref[...]     # [1, 128] lane-dense
    out_ref[...] = (1.0 / (1.0 + jnp.exp(-z))).reshape(1, 1, HEAD_PAD)


# ----------------------- wrapper: single pallas_call, grid over batch -----------------------
def interaction_model_forward(params, input_ids, attention_mask):
    B, S = input_ids.shape
    H, F, L = HIDDEN, FFN, N_LAYERS

    # glue: embedding gather + embedding LayerNorm in plain JAX
    emb = (params['word_emb'][input_ids]
           + params['pos_emb'][None, :S, :]
           + params['type_emb'][0][None, None, :])
    mu = emb.mean(-1, keepdims=True)
    var = ((emb - mu) ** 2).mean(-1, keepdims=True)
    x = ((emb - mu) / jnp.sqrt(var + LN_EPS)
         * params['emb_ln_g'] + params['emb_ln_b']).astype(jnp.float32)

    mask_f = attention_mask.astype(jnp.float32)
    mask_k = mask_f[:, None, :]                       # [B, 1, S]  for attention bias
    mask_q = mask_f[:, :, None]                       # [B, S, 1]  for pooling

    pw1, pb1, pw2, pb2, pw3, pb3 = params['pool']

    grid_spec = pltpu.PrefetchScalarGridSpec(
        num_scalar_prefetch=0,
        grid=(B,),                                    # batch axis -> parallel (2 TCs on v7x)
        in_specs=[
            pl.BlockSpec((1, S, H), lambda b: (b, 0, 0)),        # x (one batch row / step)
            pl.BlockSpec((1, 1, S), lambda b: (b, 0, 0)),        # mask (key side)
            pl.BlockSpec((1, S, 1), lambda b: (b, 0, 0)),        # mask (pool side)
            pl.BlockSpec((L, H, 3 * H), lambda b: (0, 0, 0)),    # stacked Wqkv  (bf16)
            pl.BlockSpec((L, 1, 3 * H), lambda b: (0, 0, 0)),    # stacked bqkv
            pl.BlockSpec((L, H, H), lambda b: (0, 0, 0)),        # stacked Wo    (bf16)
            pl.BlockSpec((L, H, F), lambda b: (0, 0, 0)),        # stacked W1    (bf16)
            pl.BlockSpec((L, 1, F), lambda b: (0, 0, 0)),        # stacked b1
            pl.BlockSpec((L, F, H), lambda b: (0, 0, 0)),        # stacked W2    (bf16)
            pl.BlockSpec((L, 6, H), lambda b: (0, 0, 0)),        # packed bo/LN1/b2/LN2 slab
            pl.BlockSpec((H, 512), lambda b: (0, 0)),            # pool W1 (bf16)
            pl.BlockSpec((1, 512), lambda b: (0, 0)),
            pl.BlockSpec((512, 256), lambda b: (0, 0)),          # pool W2 (bf16)
            pl.BlockSpec((1, 256), lambda b: (0, 0)),
            pl.BlockSpec((256, HEAD_PAD), lambda b: (0, 0)),     # pool W3 lane-padded (bf16)
            pl.BlockSpec((1, HEAD_PAD), lambda b: (0, 0)),
        ],
        out_specs=pl.BlockSpec((1, 1, HEAD_PAD), lambda b: (b, 0, 0)),
    )

    out = pl.pallas_call(
        fused_forward_kernel,
        out_shape=jax.ShapeDtypeStruct((B, 1, HEAD_PAD), jnp.float32),
        grid_spec=grid_spec,
        compiler_params=pltpu.CompilerParams(dimension_semantics=("parallel",)),
    )(x, mask_k, mask_q,
      params['wqkv'], params['bqkv'], params['wo'],
      params['w1'], params['b1'], params['w2'], params['smallh'],
      pw1, pb1, pw2, pb2, pw3, pb3)

    return out[:, 0, :1]                              # [B, 1] (column 0 is the real score)


# ----------------------- deterministic parameter init -----------------------
def init_params(key):
    def nrm(k, shape, std=0.02):
        return jax.random.normal(k, shape, jnp.float32) * std

    keys = iter(jax.random.split(key, 64))
    params = {
        'word_emb': nrm(next(keys), (VOCAB, HIDDEN)),
        'pos_emb':  nrm(next(keys), (SEQ, HIDDEN)),
        'type_emb': nrm(next(keys), (2, HIDDEN)),
        'emb_ln_g': jnp.ones((HIDDEN,), jnp.float32),
        'emb_ln_b': jnp.zeros((HIDDEN,), jnp.float32),
    }

    wqkv, bqkv, wo, w1, b1, w2, smallh = [], [], [], [], [], [], []
    for _ in range(N_LAYERS):
        wq = nrm(next(keys), (HIDDEN, HIDDEN))
        wk = nrm(next(keys), (HIDDEN, HIDDEN))
        wv = nrm(next(keys), (HIDDEN, HIDDEN))
        wqkv.append(jnp.concatenate([wq, wk, wv], axis=1))           # [H, 3H]
        bqkv.append(jnp.zeros((1, 3 * HIDDEN), jnp.float32))
        wo.append(nrm(next(keys), (HIDDEN, HIDDEN)))
        w1.append(nrm(next(keys), (HIDDEN, FFN)))
        b1.append(jnp.zeros((1, FFN), jnp.float32))
        w2.append(nrm(next(keys), (FFN, HIDDEN)))
        # packed H-wide small params: [bo, ln1_gamma, ln1_beta, b2, ln2_gamma, ln2_beta]
        smallh.append(jnp.concatenate([
            jnp.zeros((1, HIDDEN)), jnp.ones((1, HIDDEN)), jnp.zeros((1, HIDDEN)),
            jnp.zeros((1, HIDDEN)), jnp.ones((1, HIDDEN)), jnp.zeros((1, HIDDEN)),
        ], axis=0).astype(jnp.float32))

    # big matrices stored bf16 (MXU-native, half the DMA bytes); biases / LN stay f32
    params['wqkv']   = jnp.stack(wqkv).astype(jnp.bfloat16)
    params['bqkv']   = jnp.stack(bqkv)
    params['wo']     = jnp.stack(wo).astype(jnp.bfloat16)
    params['w1']     = jnp.stack(w1).astype(jnp.bfloat16)
    params['b1']     = jnp.stack(b1)
    params['w2']     = jnp.stack(w2).astype(jnp.bfloat16)
    params['smallh'] = jnp.stack(smallh)

    # MLP head; last Linear padded from 1 to HEAD_PAD output columns (column 0 is real)
    pw3 = jnp.pad(nrm(next(keys), (256, 1)), ((0, 0), (0, HEAD_PAD - 1)))
    params['pool'] = (
        nrm(next(keys), (HIDDEN, 512)).astype(jnp.bfloat16), jnp.zeros((1, 512), jnp.float32),
        nrm(next(keys), (512, 256)).astype(jnp.bfloat16),    jnp.zeros((1, 256), jnp.float32),
        pw3.astype(jnp.bfloat16),                            jnp.zeros((1, HEAD_PAD), jnp.float32),
    )
    return params


# TODO(synk): save_model / load_model (.pth checkpoint I/O) have no Pallas equivalent and are omitted.

if __name__ == "__main__":
    key = jax.random.PRNGKey(0)
    k_params, k_ids = jax.random.split(key, 2)
    params = init_params(k_params)

    input_ids = jax.random.randint(k_ids, (BATCH, SEQ), 0, VOCAB, dtype=jnp.int32)
    attention_mask = jnp.array([[1, 1, 1, 1, 1, 1, 0, 0],
                                [1, 1, 1, 1, 0, 0, 0, 0]], dtype=jnp.int32)

    score = interaction_model_forward(params, input_ids, attention_mask)
    score = jax.block_until_ready(score)
    assert score.shape == (BATCH, 1)
    assert bool(jnp.all(jnp.isfinite(score)))
    assert bool(jnp.all((score >= 0.0) & (score <= 1.0)))
    print("KERNEL_OK")
</pallas_src>

<mosaic_0001>
module attributes {stable_mosaic.version = 11 : i64} {
  func.func @fused_forward_kernel(%arg0: i32, %arg1: memref<1x8x32xf32, #tpu.memory_space<vmem>>, %arg2: memref<1x1x8xf32, #tpu.memory_space<vmem>>, %arg3: memref<1x8x1xf32, #tpu.memory_space<vmem>>, %arg4: memref<2x32x96xbf16, #tpu.memory_space<vmem>>, %arg5: memref<2x1x96xf32, #tpu.memory_space<vmem>>, %arg6: memref<2x32x32xbf16, #tpu.memory_space<vmem>>, %arg7: memref<2x32x64xbf16, #tpu.memory_space<vmem>>, %arg8: memref<2x1x64xf32, #tpu.memory_space<vmem>>, %arg9: memref<2x64x32xbf16, #tpu.memory_space<vmem>>, %arg10: memref<2x6x32xf32, #tpu.memory_space<vmem>>, %arg11: memref<32x512xbf16, #tpu.memory_space<vmem>>, %arg12: memref<1x512xf32, #tpu.memory_space<vmem>>, %arg13: memref<512x256xbf16, #tpu.memory_space<vmem>>, %arg14: memref<1x256xf32, #tpu.memory_space<vmem>>, %arg15: memref<256x128xbf16, #tpu.memory_space<vmem>>, %arg16: memref<1x128xf32, #tpu.memory_space<vmem>>, %arg17: memref<1x1x128xf32, #tpu.memory_space<vmem>>) attributes {dimension_semantics = [#tpu.dimension_semantics<parallel>], iteration_bounds = array<i64: 2>, scalar_prefetch = 0 : i64, scratch_operands = 0 : i64, tpu.core_type = #tpu.core_type<tc>, window_params = [{transform_indices = @transform_0, window_bounds = array<i64: 1, 8, 32>}, {transform_indices = @transform_1, window_bounds = array<i64: 1, 1, 8>}, {transform_indices = @transform_2, window_bounds = array<i64: 1, 8, 1>}, {pipeline_mode = #tpu.pipeline_mode<synchronous>, transform_indices = @transform_3, window_bounds = array<i64: 2, 32, 96>}, {pipeline_mode = #tpu.pipeline_mode<synchronous>, transform_indices = @transform_4, window_bounds = array<i64: 2, 1, 96>}, {pipeline_mode = #tpu.pipeline_mode<synchronous>, transform_indices = @transform_5, window_bounds = array<i64: 2, 32, 32>}, {pipeline_mode = #tpu.pipeline_mode<synchronous>, transform_indices = @transform_6, window_bounds = array<i64: 2, 32, 64>}, {pipeline_mode = #tpu.pipeline_mode<synchronous>, transform_indices = @transform_7, window_bounds = array<i64: 2, 1, 64>}, {pipeline_mode = #tpu.pipeline_mode<synchronous>, transform_indices = @transform_8, window_bounds = array<i64: 2, 64, 32>}, {pipeline_mode = #tpu.pipeline_mode<synchronous>, transform_indices = @transform_9, window_bounds = array<i64: 2, 6, 32>}, {pipeline_mode = #tpu.pipeline_mode<synchronous>, transform_indices = @transform_10, window_bounds = array<i64: 32, 512>}, {pipeline_mode = #tpu.pipeline_mode<synchronous>, transform_indices = @transform_11, window_bounds = array<i64: 1, 512>}, {pipeline_mode = #tpu.pipeline_mode<synchronous>, transform_indices = @transform_12, window_bounds = array<i64: 512, 256>}, {pipeline_mode = #tpu.pipeline_mode<synchronous>, transform_indices = @transform_13, window_bounds = array<i64: 1, 256>}, {pipeline_mode = #tpu.pipeline_mode<synchronous>, transform_indices = @transform_14, window_bounds = array<i64: 256, 128>}, {pipeline_mode = #tpu.pipeline_mode<synchronous>, transform_indices = @transform_15, window_bounds = array<i64: 1, 128>}, {transform_indices = @transform_16, window_bounds = array<i64: 1, 1, 128>}]} {
    %c0 = arith.constant 0 : index
    %c0_0 = arith.constant 0 : index
    %c0_1 = arith.constant 0 : index
    %0 = vector.load %arg1[%c0, %c0_0, %c0_1] : memref<1x8x32xf32, #tpu.memory_space<vmem>>, vector<1x8x32xf32>
    %1 = vector.shape_cast %0 : vector<1x8x32xf32> to vector<8x32xf32>
    %c0_2 = arith.constant 0 : index
    %c0_3 = arith.constant 0 : index
    %c0_4 = arith.constant 0 : index
    %2 = vector.load %arg2[%c0_2, %c0_3, %c0_4] : memref<1x1x8xf32, #tpu.memory_space<vmem>>, vector<1x1x8xf32>
    %cst = arith.constant 1.000000e+00 : f32
    %3 = vector.broadcast %cst : f32 to vector<1x1x8xf32>
    %4 = arith.subf %3, %2 : vector<1x1x8xf32>
    %cst_5 = arith.constant -1.000000e+09 : f32
    %5 = vector.broadcast %cst_5 : f32 to vector<1x1x8xf32>
    %6 = arith.mulf %4, %5 : vector<1x1x8xf32>
    %c0_6 = arith.constant 0 : index
    %c0_7 = arith.constant 0 : index
    %c0_8 = arith.constant 0 : index
    %7 = vector.load %arg4[%c0_6, %c0_7, %c0_8] : memref<2x32x96xbf16, #tpu.memory_space<vmem>>, vector<1x32x96xbf16>
    %8 = vector.shape_cast %7 : vector<1x32x96xbf16> to vector<32x96xbf16>
    %c0_9 = arith.constant 0 : index
    %c0_10 = arith.constant 0 : index
    %c0_11 = arith.constant 0 : index
    %9 = vector.load %arg5[%c0_9, %c0_10, %c0_11] : memref<2x1x96xf32, #tpu.memory_space<vmem>>, vector<1x1x96xf32>
    %10 = vector.shape_cast %9 : vector<1x1x96xf32> to vector<1x96xf32>
    %c0_12 = arith.constant 0 : index
    %c0_13 = arith.constant 0 : index
    %c0_14 = arith.constant 0 : index
    %11 = vector.load %arg6[%c0_12, %c0_13, %c0_14] : memref<2x32x32xbf16, #tpu.memory_space<vmem>>, vector<1x32x32xbf16>
    %12 = vector.shape_cast %11 : vector<1x32x32xbf16> to vector<32x32xbf16>
    %c0_15 = arith.constant 0 : index
    %c0_16 = arith.constant 0 : index
    %c0_17 = arith.constant 0 : index
    %13 = vector.load %arg7[%c0_15, %c0_16, %c0_17] : memref<2x32x64xbf16, #tpu.memory_space<vmem>>, vector<1x32x64xbf16>
    %14 = vector.shape_cast %13 : vector<1x32x64xbf16> to vector<32x64xbf16>
    %c0_18 = arith.constant 0 : index
    %c0_19 = arith.constant 0 : index
    %c0_20 = arith.constant 0 : index
    %15 = vector.load %arg8[%c0_18, %c0_19, %c0_20] : memref<2x1x64xf32, #tpu.memory_space<vmem>>, vector<1x1x64xf32>
    %16 = vector.shape_cast %15 : vector<1x1x64xf32> to vector<1x64xf32>
    %c0_21 = arith.constant 0 : index
    %c0_22 = arith.constant 0 : index
    %c0_23 = arith.constant 0 : index
    %17 = vector.load %arg9[%c0_21, %c0_22, %c0_23] : memref<2x64x32xbf16, #tpu.memory_space<vmem>>, vector<1x64x32xbf16>
    %18 = vector.shape_cast %17 : vector<1x64x32xbf16> to vector<64x32xbf16>
    %c0_24 = arith.constant 0 : index
    %c0_25 = arith.constant 0 : index
    %c0_26 = arith.constant 0 : index
    %19 = vector.load %arg10[%c0_24, %c0_25, %c0_26] : memref<2x6x32xf32, #tpu.memory_space<vmem>>, vector<1x6x32xf32>
    %20 = vector.shape_cast %19 : vector<1x6x32xf32> to vector<6x32xf32>
    %21 = vector.extract_strided_slice %20 {offsets = [0, 0], sizes = [1, 32], strides = [1, 1]} : vector<6x32xf32> to vector<1x32xf32>
    %22 = vector.extract_strided_slice %20 {offsets = [1, 0], sizes = [1, 32], strides = [1, 1]} : vector<6x32xf32> to vector<1x32xf32>
    %23 = vector.extract_strided_slice %20 {offsets = [2, 0], sizes = [1, 32], strides = [1, 1]} : vector<6x32xf32> to vector<1x32xf32>
    %24 = vector.extract_strided_slice %20 {offsets = [3, 0], sizes = [1, 32], strides = [1, 1]} : vector<6x32xf32> to vector<1x32xf32>
    %25 = vector.extract_strided_slice %20 {offsets = [4, 0], sizes = [1, 32], strides = [1, 1]} : vector<6x32xf32> to vector<1x32xf32>
    %26 = vector.extract_strided_slice %20 {offsets = [5, 0], sizes = [1, 32], strides = [1, 1]} : vector<6x32xf32> to vector<1x32xf32>
    %27 = arith.truncf %1 : vector<8x32xf32> to vector<8x32xbf16>
    %cst_27 = arith.constant dense<0.000000e+00> : vector<8x96xf32>
    %28 = tpu.matmul %27, %8, %cst_27 {dimension_numbers = #tpu.dot_dimension_numbers<[1], [0], [0], [1], [0, 0, 1, 1], [], []>} : vector<8x32xbf16>, vector<32x96xbf16>, vector<8x96xf32> -> vector<8x96xf32>
    %29 = vector.broadcast %10 : vector<1x96xf32> to vector<8x96xf32>
    %30 = arith.addf %28, %29 : vector<8x96xf32>
    %31 = vector.extract_strided_slice %30 {offsets = [0, 0], sizes = [8, 32], strides = [1, 1]} : vector<8x96xf32> to vector<8x32xf32>
    %32 = vector.extract_strided_slice %31 {offsets = [0, 0], sizes = [8, 16], strides = [1, 1]} : vector<8x32xf32> to vector<8x16xf32>
    %33 = vector.extract_strided_slice %31 {offsets = [0, 16], sizes = [8, 16], strides = [1, 1]} : vector<8x32xf32> to vector<8x16xf32>
    %34 = vector.shape_cast %32 : vector<8x16xf32> to vector<1x8x16xf32>
    %35 = vector.shape_cast %33 : vector<8x16xf32> to vector<1x8x16xf32>
    %36 = tpu.concatenate %34, %35 in 0 : vector<1x8x16xf32>, vector<1x8x16xf32> -> vector<2x8x16xf32>
    %37 = vector.extract_strided_slice %30 {offsets = [0, 32], sizes = [8, 32], strides = [1, 1]} : vector<8x96xf32> to vector<8x32xf32>
    %38 = vector.extract_strided_slice %37 {offsets = [0, 0], sizes = [8, 16], strides = [1, 1]} : vector<8x32xf32> to vector<8x16xf32>
    %39 = vector.extract_strided_slice %37 {offsets = [0, 16], sizes = [8, 16], strides = [1, 1]} : vector<8x32xf32> to vector<8x16xf32>
    %40 = vector.shape_cast %38 : vector<8x16xf32> to vector<1x8x16xf32>
    %41 = vector.shape_cast %39 : vector<8x16xf32> to vector<1x8x16xf32>
    %42 = tpu.concatenate %40, %41 in 0 : vector<1x8x16xf32>, vector<1x8x16xf32> -> vector<2x8x16xf32>
    %43 = vector.extract_strided_slice %30 {offsets = [0, 64], sizes = [8, 32], strides = [1, 1]} : vector<8x96xf32> to vector<8x32xf32>
    %44 = vector.extract_strided_slice %43 {offsets = [0, 0], sizes = [8, 16], strides = [1, 1]} : vector<8x32xf32> to vector<8x16xf32>
    %45 = vector.extract_strided_slice %43 {offsets = [0, 16], sizes = [8, 16], strides = [1, 1]} : vector<8x32xf32> to vector<8x16xf32>
    %46 = vector.shape_cast %44 : vector<8x16xf32> to vector<1x8x16xf32>
    %47 = vector.shape_cast %45 : vector<8x16xf32> to vector<1x8x16xf32>
    %48 = tpu.concatenate %46, %47 in 0 : vector<1x8x16xf32>, vector<1x8x16xf32> -> vector<2x8x16xf32>
    "tpu.trace_start"() <{level = 10 : i32, message = "hqd,hkd->hqk"}> : () -> ()
    %cst_28 = arith.constant dense<0.000000e+00> : vector<2x8x8xf32>
    %49 = tpu.matmul %36, %42, %cst_28 {dimension_numbers = #tpu.dot_dimension_numbers<[2], [2], [1], [1], [0, 0, 0, 1, 1, 1], [0], [0]>} : vector<2x8x16xf32>, vector<2x8x16xf32>, vector<2x8x8xf32> -> vector<2x8x8xf32>
    "tpu.trace_stop"() : () -> ()
    %cst_29 = arith.constant 2.500000e-01 : f32
    %50 = vector.broadcast %cst_29 : f32 to vector<2x8x8xf32>
    %51 = arith.mulf %49, %50 : vector<2x8x8xf32>
    %52 = vector.broadcast %6 : vector<1x1x8xf32> to vector<2x8x8xf32>
    %53 = arith.addf %51, %52 : vector<2x8x8xf32>
    %cst_30 = arith.constant dense<0xFF800000> : vector<2x8xf32>
    %54 = vector.multi_reduction <maximumf>, %53, %cst_30 [2] : vector<2x8x8xf32> to vector<2x8xf32>
    %55 = vector.shape_cast %54 : vector<2x8xf32> to vector<2x8x1xf32>
    %56 = vector.broadcast %55 : vector<2x8x1xf32> to vector<2x8x8xf32>
    %57 = arith.subf %53, %56 : vector<2x8x8xf32>
    %58 = math.exp %57 : vector<2x8x8xf32>
    %cst_31 = arith.constant dense<0.000000e+00> : vector<2x8xf32>
    %59 = vector.multi_reduction <add>, %58, %cst_31 [2] : vector<2x8x8xf32> to vector<2x8xf32>
    %60 = vector.shape_cast %59 : vector<2x8xf32> to vector<2x8x1xf32>
    %61 = tpu.reciprocal %60 {approx = true} : vector<2x8x1xf32> -> vector<2x8x1xf32>
    %62 = vector.broadcast %61 : vector<2x8x1xf32> to vector<2x8x8xf32>
    %63 = arith.mulf %58, %62 : vector<2x8x8xf32>
    "tpu.trace_start"() <{level = 10 : i32, message = "hqk,hkd->hqd"}> : () -> ()
    %cst_32 = arith.constant dense<0.000000e+00> : vector<2x8x16xf32>
    %64 = tpu.matmul %63, %48, %cst_32 {dimension_numbers = #tpu.dot_dimension_numbers<[2], [1], [1], [2], [0, 0, 0, 1, 1, 2], [0], [0]>} : vector<2x8x8xf32>, vector<2x8x16xf32>, vector<2x8x16xf32> -> vector<2x8x16xf32>
    "tpu.trace_stop"() : () -> ()
    %65 = vector.extract_strided_slice %64 {offsets = [0, 0, 0], sizes = [1, 8, 16], strides = [1, 1, 1]} : vector<2x8x16xf32> to vector<1x8x16xf32>
    %66 = vector.shape_cast %65 : vector<1x8x16xf32> to vector<8x16xf32>
    %67 = vector.extract_strided_slice %64 {offsets = [1, 0, 0], sizes = [1, 8, 16], strides = [1, 1, 1]} : vector<2x8x16xf32> to vector<1x8x16xf32>
    %68 = vector.shape_cast %67 : vector<1x8x16xf32> to vector<8x16xf32>
    %69 = tpu.concatenate %66, %68 in 1 : vector<8x16xf32>, vector<8x16xf32> -> vector<8x32xf32>
    %70 = arith.truncf %69 : vector<8x32xf32> to vector<8x32xbf16>
    %cst_33 = arith.constant dense<0.000000e+00> : vector<8x32xf32>
    %71 = tpu.matmul %70, %12, %cst_33 {dimension_numbers = #tpu.dot_dimension_numbers<[1], [0], [0], [1], [0, 0, 1, 1], [], []>} : vector<8x32xbf16>, vector<32x32xbf16>, vector<8x32xf32> -> vector<8x32xf32>
    %72 = vector.broadcast %21 : vector<1x32xf32> to vector<8x32xf32>
    %73 = arith.addf %71, %72 : vector<8x32xf32>
    %74 = arith.addf %1, %73 : vector<8x32xf32>
    %cst_34 = arith.constant dense<0.000000e+00> : vector<8xf32>
    %75 = vector.multi_reduction <add>, %74, %cst_34 [1] : vector<8x32xf32> to vector<8xf32>
    %76 = vector.shape_cast %75 : vector<8xf32> to vector<8x1xf32>
    %cst_35 = arith.constant 3.200000e+01 : f32
    %77 = vector.broadcast %cst_35 : f32 to vector<8x1xf32>
    %78 = arith.divf %76, %77 : vector<8x1xf32>
    %79 = vector.broadcast %78 : vector<8x1xf32> to vector<8x32xf32>
    %80 = arith.subf %74, %79 : vector<8x32xf32>
    %81 = arith.mulf %80, %80 : vector<8x32xf32>
    %cst_36 = arith.constant dense<0.000000e+00> : vector<8xf32>
    %82 = vector.multi_reduction <add>, %81, %cst_36 [1] : vector<8x32xf32> to vector<8xf32>
    %83 = vector.shape_cast %82 : vector<8xf32> to vector<8x1xf32>
    %cst_37 = arith.constant 3.200000e+01 : f32
    %84 = vector.broadcast %cst_37 : f32 to vector<8x1xf32>
    %85 = arith.divf %83, %84 : vector<8x1xf32>
    %86 = vector.broadcast %78 : vector<8x1xf32> to vector<8x32xf32>
    %87 = arith.subf %74, %86 : vector<8x32xf32>
    %cst_38 = arith.constant 9.99999996E-13 : f32
    %88 = vector.broadcast %cst_38 : f32 to vector<8x1xf32>
    %89 = arith.addf %85, %88 : vector<8x1xf32>
    %90 = math.rsqrt %89 : vector<8x1xf32>
    %91 = vector.broadcast %90 : vector<8x1xf32> to vector<8x32xf32>
    %92 = arith.mulf %87, %91 : vector<8x32xf32>
    %93 = vector.broadcast %22 : vector<1x32xf32> to vector<8x32xf32>
    %94 = arith.mulf %92, %93 : vector<8x32xf32>
    %95 = vector.broadcast %23 : vector<1x32xf32> to vector<8x32xf32>
    %96 = arith.addf %94, %95 : vector<8x32xf32>
    %97 = arith.truncf %96 : vector<8x32xf32> to vector<8x32xbf16>
    %cst_39 = arith.constant dense<0.000000e+00> : vector<8x64xf32>
    %98 = tpu.matmul %97, %14, %cst_39 {dimension_numbers = #tpu.dot_dimension_numbers<[1], [0], [0], [1], [0, 0, 1, 1], [], []>} : vector<8x32xbf16>, vector<32x64xbf16>, vector<8x64xf32> -> vector<8x64xf32>
    %99 = vector.broadcast %16 : vector<1x64xf32> to vector<8x64xf32>
    %100 = arith.addf %98, %99 : vector<8x64xf32>
    %cst_40 = arith.constant 5.000000e-01 : f32
    %101 = vector.broadcast %cst_40 : f32 to vector<8x64xf32>
    %102 = arith.mulf %101, %100 : vector<8x64xf32>
    %cst_41 = arith.constant 0.707106769 : f32
    %103 = vector.broadcast %cst_41 : f32 to vector<8x64xf32>
    %104 = arith.mulf %100, %103 : vector<8x64xf32>
    %cst_42 = arith.constant 0.000000e+00 : f32
    %105 = vector.broadcast %cst_42 : f32 to vector<8x64xf32>
    %106 = arith.cmpf oge, %104, %105 : vector<8x64xf32>
    %cst_43 = arith.constant 1.000000e+00 : f32
    %cst_44 = arith.constant -1.000000e+00 : f32
    %107 = vector.broadcast %cst_43 : f32 to vector<8x64xf32>
    %108 = vector.broadcast %cst_44 : f32 to vector<8x64xf32>
    %109 = arith.select %106, %107, %108 : vector<8x64xi1>, vector<8x64xf32>
    %110 = math.absf %104 : vector<8x64xf32>
    %cst_45 = arith.constant 0.327591091 : f32
    %111 = vector.broadcast %cst_45 : f32 to vector<8x64xf32>
    %112 = arith.mulf %111, %110 : vector<8x64xf32>
    %cst_46 = arith.constant 1.000000e+00 : f32
    %113 = vector.broadcast %cst_46 : f32 to vector<8x64xf32>
    %114 = arith.addf %113, %112 : vector<8x64xf32>
    %cst_47 = arith.constant 1.000000e+00 : f32
    %115 = vector.broadcast %cst_47 : f32 to vector<8x64xf32>
    %116 = arith.divf %115, %114 : vector<8x64xf32>
    %cst_48 = arith.constant 1.06140542 : f32
    %117 = vector.broadcast %cst_48 : f32 to vector<8x64xf32>
    %118 = arith.mulf %117, %116 : vector<8x64xf32>
    %cst_49 = arith.constant -1.45315206 : f32
    %119 = vector.broadcast %cst_49 : f32 to vector<8x64xf32>
    %120 = arith.addf %118, %119 : vector<8x64xf32>
    %121 = arith.mulf %120, %116 : vector<8x64xf32>
    %cst_50 = arith.constant 1.42141378 : f32
    %122 = vector.broadcast %cst_50 : f32 to vector<8x64xf32>
    %123 = arith.addf %121, %122 : vector<8x64xf32>
    %124 = arith.mulf %123, %116 : vector<8x64xf32>
    %cst_51 = arith.constant -0.284496725 : f32
    %125 = vector.broadcast %cst_51 : f32 to vector<8x64xf32>
    %126 = arith.addf %124, %125 : vector<8x64xf32>
    %127 = arith.mulf %126, %116 : vector<8x64xf32>
    %cst_52 = arith.constant 0.254829586 : f32
    %128 = vector.broadcast %cst_52 : f32 to vector<8x64xf32>
    %129 = arith.addf %127, %128 : vector<8x64xf32>
    %130 = arith.mulf %129, %116 : vector<8x64xf32>
    %cst_53 = arith.constant 0.000000e+00 : f32
    %131 = vector.broadcast %cst_53 : f32 to vector<8x64xf32>
    %132 = arith.subf %131, %110 : vector<8x64xf32>
    %133 = arith.mulf %132, %110 : vector<8x64xf32>
    %134 = math.exp %133 : vector<8x64xf32>
    %135 = arith.mulf %130, %134 : vector<8x64xf32>
    %cst_54 = arith.constant 1.000000e+00 : f32
    %136 = vector.broadcast %cst_54 : f32 to vector<8x64xf32>
    %137 = arith.subf %136, %135 : vector<8x64xf32>
    %138 = arith.mulf %109, %137 : vector<8x64xf32>
    %cst_55 = arith.constant 1.000000e+00 : f32
    %139 = vector.broadcast %cst_55 : f32 to vector<8x64xf32>
    %140 = arith.addf %139, %138 : vector<8x64xf32>
    %141 = arith.mulf %102, %140 : vector<8x64xf32>
    %142 = arith.truncf %141 : vector<8x64xf32> to vector<8x64xbf16>
    %cst_56 = arith.constant dense<0.000000e+00> : vector<8x32xf32>
    %143 = tpu.matmul %142, %18, %cst_56 {dimension_numbers = #tpu.dot_dimension_numbers<[1], [0], [0], [1], [0, 0, 1, 1], [], []>} : vector<8x64xbf16>, vector<64x32xbf16>, vector<8x32xf32> -> vector<8x32xf32>
    %144 = vector.broadcast %24 : vector<1x32xf32> to vector<8x32xf32>
    %145 = arith.addf %143, %144 : vector<8x32xf32>
    %146 = arith.addf %96, %145 : vector<8x32xf32>
    %cst_57 = arith.constant dense<0.000000e+00> : vector<8xf32>
    %147 = vector.multi_reduction <add>, %146, %cst_57 [1] : vector<8x32xf32> to vector<8xf32>
    %148 = vector.shape_cast %147 : vector<8xf32> to vector<8x1xf32>
    %cst_58 = arith.constant 3.200000e+01 : f32
    %149 = vector.broadcast %cst_58 : f32 to vector<8x1xf32>
    %150 = arith.divf %148, %149 : vector<8x1xf32>
    %151 = vector.broadcast %150 : vector<8x1xf32> to vector<8x32xf32>
    %152 = arith.subf %146, %151 : vector<8x32xf32>
    %153 = arith.mulf %152, %152 : vector<8x32xf32>
    %cst_59 = arith.constant dense<0.000000e+00> : vector<8xf32>
    %154 = vector.multi_reduction <add>, %153, %cst_59 [1] : vector<8x32xf32> to vector<8xf32>
    %155 = vector.shape_cast %154 : vector<8xf32> to vector<8x1xf32>
    %cst_60 = arith.constant 3.200000e+01 : f32
    %156 = vector.broadcast %cst_60 : f32 to vector<8x1xf32>
    %157 = arith.divf %155, %156 : vector<8x1xf32>
    %158 = vector.broadcast %150 : vector<8x1xf32> to vector<8x32xf32>
    %159 = arith.subf %146, %158 : vector<8x32xf32>
    %cst_61 = arith.constant 9.99999996E-13 : f32
    %160 = vector.broadcast %cst_61 : f32 to vector<8x1xf32>
    %161 = arith.addf %157, %160 : vector<8x1xf32>
    %162 = math.rsqrt %161 : vector<8x1xf32>
    %163 = vector.broadcast %162 : vector<8x1xf32> to vector<8x32xf32>
    %164 = arith.mulf %159, %163 : vector<8x32xf32>
    %165 = vector.broadcast %25 : vector<1x32xf32> to vector<8x32xf32>
    %166 = arith.mulf %164, %165 : vector<8x32xf32>
    %167 = vector.broadcast %26 : vector<1x32xf32> to vector<8x32xf32>
    %168 = arith.addf %166, %167 : vector<8x32xf32>
    %c1 = arith.constant 1 : index
    %c0_62 = arith.constant 0 : index
    %c0_63 = arith.constant 0 : index
    %169 = vector.load %arg4[%c1, %c0_62, %c0_63] : memref<2x32x96xbf16, #tpu.memory_space<vmem>>, vector<1x32x96xbf16>
    %170 = vector.shape_cast %169 : vector<1x32x96xbf16> to vector<32x96xbf16>
    %c1_64 = arith.constant 1 : index
    %c0_65 = arith.constant 0 : index
    %c0_66 = arith.constant 0 : index
    %171 = vector.load %arg5[%c1_64, %c0_65, %c0_66] : memref<2x1x96xf32, #tpu.memory_space<vmem>>, vector<1x1x96xf32>
    %172 = vector.shape_cast %171 : vector<1x1x96xf32> to vector<1x96xf32>
    %c1_67 = arith.constant 1 : index
    %c0_68 = arith.constant 0 : index
    %c0_69 = arith.constant 0 : index
    %173 = vector.load %arg6[%c1_67, %c0_68, %c0_69] : memref<2x32x32xbf16, #tpu.memory_space<vmem>>, vector<1x32x32xbf16>
    %174 = vector.shape_cast %173 : vector<1x32x32xbf16> to vector<32x32xbf16>
    %c1_70 = arith.constant 1 : index
    %c0_71 = arith.constant 0 : index
    %c0_72 = arith.constant 0 : index
    %175 = vector.load %arg7[%c1_70, %c0_71, %c0_72] : memref<2x32x64xbf16, #tpu.memory_space<vmem>>, vector<1x32x64xbf16>
    %176 = vector.shape_cast %175 : vector<1x32x64xbf16> to vector<32x64xbf16>
    %c1_73 = arith.constant 1 : index
    %c0_74 = arith.constant 0 : index
    %c0_75 = arith.constant 0 : index
    %177 = vector.load %arg8[%c1_73, %c0_74, %c0_75] : memref<2x1x64xf32, #tpu.memory_space<vmem>>, vector<1x1x64xf32>
    %178 = vector.shape_cast %177 : vector<1x1x64xf32> to vector<1x64xf32>
    %c1_76 = arith.constant 1 : index
    %c0_77 = arith.constant 0 : index
    %c0_78 = arith.constant 0 : index
    %179 = vector.load %arg9[%c1_76, %c0_77, %c0_78] : memref<2x64x32xbf16, #tpu.memory_space<vmem>>, vector<1x64x32xbf16>
    %180 = vector.shape_cast %179 : vector<1x64x32xbf16> to vector<64x32xbf16>
    %c1_79 = arith.constant 1 : index
    %c0_80 = arith.constant 0 : index
    %c0_81 = arith.constant 0 : index
    %181 = vector.load %arg10[%c1_79, %c0_80, %c0_81] : memref<2x6x32xf32, #tpu.memory_space<vmem>>, vector<1x6x32xf32>
    %182 = vector.shape_cast %181 : vector<1x6x32xf32> to vector<6x32xf32>
    %183 = vector.extract_strided_slice %182 {offsets = [0, 0], sizes = [1, 32], strides = [1, 1]} : vector<6x32xf32> to vector<1x32xf32>
    %184 = vector.extract_strided_slice %182 {offsets = [1, 0], sizes = [1, 32], strides = [1, 1]} : vector<6x32xf32> to vector<1x32xf32>
    %185 = vector.extract_strided_slice %182 {offsets = [2, 0], sizes = [1, 32], strides = [1, 1]} : vector<6x32xf32> to vector<1x32xf32>
    %186 = vector.extract_strided_slice %182 {offsets = [3, 0], sizes = [1, 32], strides = [1, 1]} : vector<6x32xf32> to vector<1x32xf32>
    %187 = vector.extract_strided_slice %182 {offsets = [4, 0], sizes = [1, 32], strides = [1, 1]} : vector<6x32xf32> to vector<1x32xf32>
    %188 = vector.extract_strided_slice %182 {offsets = [5, 0], sizes = [1, 32], strides = [1, 1]} : vector<6x32xf32> to vector<1x32xf32>
    %189 = arith.truncf %168 : vector<8x32xf32> to vector<8x32xbf16>
    %cst_82 = arith.constant dense<0.000000e+00> : vector<8x96xf32>
    %190 = tpu.matmul %189, %170, %cst_82 {dimension_numbers = #tpu.dot_dimension_numbers<[1], [0], [0], [1], [0, 0, 1, 1], [], []>} : vector<8x32xbf16>, vector<32x96xbf16>, vector<8x96xf32> -> vector<8x96xf32>
    %191 = vector.broadcast %172 : vector<1x96xf32> to vector<8x96xf32>
    %192 = arith.addf %190, %191 : vector<8x96xf32>
    %193 = vector.extract_strided_slice %192 {offsets = [0, 0], sizes = [8, 32], strides = [1, 1]} : vector<8x96xf32> to vector<8x32xf32>
    %194 = vector.extract_strided_slice %193 {offsets = [0, 0], sizes = [8, 16], strides = [1, 1]} : vector<8x32xf32> to vector<8x16xf32>
    %195 = vector.extract_strided_slice %193 {offsets = [0, 16], sizes = [8, 16], strides = [1, 1]} : vector<8x32xf32> to vector<8x16xf32>
    %196 = vector.shape_cast %194 : vector<8x16xf32> to vector<1x8x16xf32>
    %197 = vector.shape_cast %195 : vector<8x16xf32> to vector<1x8x16xf32>
    %198 = tpu.concatenate %196, %197 in 0 : vector<1x8x16xf32>, vector<1x8x16xf32> -> vector<2x8x16xf32>
    %199 = vector.extract_strided_slice %192 {offsets = [0, 32], sizes = [8, 32], strides = [1, 1]} : vector<8x96xf32> to vector<8x32xf32>
    %200 = vector.extract_strided_slice %199 {offsets = [0, 0], sizes = [8, 16], strides = [1, 1]} : vector<8x32xf32> to vector<8x16xf32>
    %201 = vector.extract_strided_slice %199 {offsets = [0, 16], sizes = [8, 16], strides = [1, 1]} : vector<8x32xf32> to vector<8x16xf32>
    %202 = vector.shape_cast %200 : vector<8x16xf32> to vector<1x8x16xf32>
    %203 = vector.shape_cast %201 : vector<8x16xf32> to vector<1x8x16xf32>
    %204 = tpu.concatenate %202, %203 in 0 : vector<1x8x16xf32>, vector<1x8x16xf32> -> vector<2x8x16xf32>
    %205 = vector.extract_strided_slice %192 {offsets = [0, 64], sizes = [8, 32], strides = [1, 1]} : vector<8x96xf32> to vector<8x32xf32>
    %206 = vector.extract_strided_slice %205 {offsets = [0, 0], sizes = [8, 16], strides = [1, 1]} : vector<8x32xf32> to vector<8x16xf32>
    %207 = vector.extract_strided_slice %205 {offsets = [0, 16], sizes = [8, 16], strides = [1, 1]} : vector<8x32xf32> to vector<8x16xf32>
    %208 = vector.shape_cast %206 : vector<8x16xf32> to vector<1x8x16xf32>
    %209 = vector.shape_cast %207 : vector<8x16xf32> to vector<1x8x16xf32>
    %210 = tpu.concatenate %208, %209 in 0 : vector<1x8x16xf32>, vector<1x8x16xf32> -> vector<2x8x16xf32>
    "tpu.trace_start"() <{level = 10 : i32, message = "hqd,hkd->hqk"}> : () -> ()
    %cst_83 = arith.constant dense<0.000000e+00> : vector<2x8x8xf32>
    %211 = tpu.matmul %198, %204, %cst_83 {dimension_numbers = #tpu.dot_dimension_numbers<[2], [2], [1], [1], [0, 0, 0, 1, 1, 1], [0], [0]>} : vector<2x8x16xf32>, vector<2x8x16xf32>, vector<2x8x8xf32> -> vector<2x8x8xf32>
    "tpu.trace_stop"() : () -> ()
    %cst_84 = arith.constant 2.500000e-01 : f32
    %212 = vector.broadcast %cst_84 : f32 to vector<2x8x8xf32>
    %213 = arith.mulf %211, %212 : vector<2x8x8xf32>
    %214 = vector.broadcast %6 : vector<1x1x8xf32> to vector<2x8x8xf32>
    %215 = arith.addf %213, %214 : vector<2x8x8xf32>
    %cst_85 = arith.constant dense<0xFF800000> : vector<2x8xf32>
    %216 = vector.multi_reduction <maximumf>, %215, %cst_85 [2] : vector<2x8x8xf32> to vector<2x8xf32>
    %217 = vector.shape_cast %216 : vector<2x8xf32> to vector<2x8x1xf32>
    %218 = vector.broadcast %217 : vector<2x8x1xf32> to vector<2x8x8xf32>
    %219 = arith.subf %215, %218 : vector<2x8x8xf32>
    %220 = math.exp %219 : vector<2x8x8xf32>
    %cst_86 = arith.constant dense<0.000000e+00> : vector<2x8xf32>
    %221 = vector.multi_reduction <add>, %220, %cst_86 [2] : vector<2x8x8xf32> to vector<2x8xf32>
    %222 = vector.shape_cast %221 : vector<2x8xf32> to vector<2x8x1xf32>
    %223 = tpu.reciprocal %222 {approx = true} : vector<2x8x1xf32> -> vector<2x8x1xf32>
    %224 = vector.broadcast %223 : vector<2x8x1xf32> to vector<2x8x8xf32>
    %225 = arith.mulf %220, %224 : vector<2x8x8xf32>
    "tpu.trace_start"() <{level = 10 : i32, message = "hqk,hkd->hqd"}> : () -> ()
    %cst_87 = arith.constant dense<0.000000e+00> : vector<2x8x16xf32>
    %226 = tpu.matmul %225, %210, %cst_87 {dimension_numbers = #tpu.dot_dimension_numbers<[2], [1], [1], [2], [0, 0, 0, 1, 1, 2], [0], [0]>} : vector<2x8x8xf32>, vector<2x8x16xf32>, vector<2x8x16xf32> -> vector<2x8x16xf32>
    "tpu.trace_stop"() : () -> ()
    %227 = vector.extract_strided_slice %226 {offsets = [0, 0, 0], sizes = [1, 8, 16], strides = [1, 1, 1]} : vector<2x8x16xf32> to vector<1x8x16xf32>
    %228 = vector.shape_cast %227 : vector<1x8x16xf32> to vector<8x16xf32>
    %229 = vector.extract_strided_slice %226 {offsets = [1, 0, 0], sizes = [1, 8, 16], strides = [1, 1, 1]} : vector<2x8x16xf32> to vector<1x8x16xf32>
    %230 = vector.shape_cast %229 : vector<1x8x16xf32> to vector<8x16xf32>
    %231 = tpu.concatenate %228, %230 in 1 : vector<8x16xf32>, vector<8x16xf32> -> vector<8x32xf32>
    %232 = arith.truncf %231 : vector<8x32xf32> to vector<8x32xbf16>
    %cst_88 = arith.constant dense<0.000000e+00> : vector<8x32xf32>
    %233 = tpu.matmul %232, %174, %cst_88 {dimension_numbers = #tpu.dot_dimension_numbers<[1], [0], [0], [1], [0, 0, 1, 1], [], []>} : vector<8x32xbf16>, vector<32x32xbf16>, vector<8x32xf32> -> vector<8x32xf32>
    %234 = vector.broadcast %183 : vector<1x32xf32> to vector<8x32xf32>
    %235 = arith.addf %233, %234 : vector<8x32xf32>
    %236 = arith.addf %168, %235 : vector<8x32xf32>
    %cst_89 = arith.constant dense<0.000000e+00> : vector<8xf32>
    %237 = vector.multi_reduction <add>, %236, %cst_89 [1] : vector<8x32xf32> to vector<8xf32>
    %238 = vector.shape_cast %237 : vector<8xf32> to vector<8x1xf32>
    %cst_90 = arith.constant 3.200000e+01 : f32
    %239 = vector.broadcast %cst_90 : f32 to vector<8x1xf32>
    %240 = arith.divf %238, %239 : vector<8x1xf32>
    %241 = vector.broadcast %240 : vector<8x1xf32> to vector<8x32xf32>
    %242 = arith.subf %236, %241 : vector<8x32xf32>
    %243 = arith.mulf %242, %242 : vector<8x32xf32>
    %cst_91 = arith.constant dense<0.000000e+00> : vector<8xf32>
    %244 = vector.multi_reduction <add>, %243, %cst_91 [1] : vector<8x32xf32> to vector<8xf32>
    %245 = vector.shape_cast %244 : vector<8xf32> to vector<8x1xf32>
    %cst_92 = arith.constant 3.200000e+01 : f32
    %246 = vector.broadcast %cst_92 : f32 to vector<8x1xf32>
    %247 = arith.divf %245, %246 : vector<8x1xf32>
    %248 = vector.broadcast %240 : vector<8x1xf32> to vector<8x32xf32>
    %249 = arith.subf %236, %248 : vector<8x32xf32>
    %cst_93 = arith.constant 9.99999996E-13 : f32
    %250 = vector.broadcast %cst_93 : f32 to vector<8x1xf32>
    %251 = arith.addf %247, %250 : vector<8x1xf32>
    %252 = math.rsqrt %251 : vector<8x1xf32>
    %253 = vector.broadcast %252 : vector<8x1xf32> to vector<8x32xf32>
    %254 = arith.mulf %249, %253 : vector<8x32xf32>
    %255 = vector.broadcast %184 : vector<1x32xf32> to vector<8x32xf32>
    %256 = arith.mulf %254, %255 : vector<8x32xf32>
    %257 = vector.broadcast %185 : vector<1x32xf32> to vector<8x32xf32>
    %258 = arith.addf %256, %257 : vector<8x32xf32>
    %259 = arith.truncf %258 : vector<8x32xf32> to vector<8x32xbf16>
    %cst_94 = arith.constant dense<0.000000e+00> : vector<8x64xf32>
    %260 = tpu.matmul %259, %176, %cst_94 {dimension_numbers = #tpu.dot_dimension_numbers<[1], [0], [0], [1], [0, 0, 1, 1], [], []>} : vector<8x32xbf16>, vector<32x64xbf16>, vector<8x64xf32> -> vector<8x64xf32>
    %261 = vector.broadcast %178 : vector<1x64xf32> to vector<8x64xf32>
    %262 = arith.addf %260, %261 : vector<8x64xf32>
    %cst_95 = arith.constant 5.000000e-01 : f32
    %263 = vector.broadcast %cst_95 : f32 to vector<8x64xf32>
    %264 = arith.mulf %263, %262 : vector<8x64xf32>
    %cst_96 = arith.constant 0.707106769 : f32
    %265 = vector.broadcast %cst_96 : f32 to vector<8x64xf32>
    %266 = arith.mulf %262, %265 : vector<8x64xf32>
    %cst_97 = arith.constant 0.000000e+00 : f32
    %267 = vector.broadcast %cst_97 : f32 to vector<8x64xf32>
    %268 = arith.cmpf oge, %266, %267 : vector<8x64xf32>
    %cst_98 = arith.constant 1.000000e+00 : f32
    %cst_99 = arith.constant -1.000000e+00 : f32
    %269 = vector.broadcast %cst_98 : f32 to vector<8x64xf32>
    %270 = vector.broadcast %cst_99 : f32 to vector<8x64xf32>
    %271 = arith.select %268, %269, %270 : vector<8x64xi1>, vector<8x64xf32>
    %272 = math.absf %266 : vector<8x64xf32>
    %cst_100 = arith.constant 0.327591091 : f32
    %273 = vector.broadcast %cst_100 : f32 to vector<8x64xf32>
    %274 = arith.mulf %273, %272 : vector<8x64xf32>
    %cst_101 = arith.constant 1.000000e+00 : f32
    %275 = vector.broadcast %cst_101 : f32 to vector<8x64xf32>
    %276 = arith.addf %275, %274 : vector<8x64xf32>
    %cst_102 = arith.constant 1.000000e+00 : f32
    %277 = vector.broadcast %cst_102 : f32 to vector<8x64xf32>
    %278 = arith.divf %277, %276 : vector<8x64xf32>
    %cst_103 = arith.constant 1.06140542 : f32
    %279 = vector.broadcast %cst_103 : f32 to vector<8x64xf32>
    %280 = arith.mulf %279, %278 : vector<8x64xf32>
    %cst_104 = arith.constant -1.45315206 : f32
    %281 = vector.broadcast %cst_104 : f32 to vector<8x64xf32>
    %282 = arith.addf %280, %281 : vector<8x64xf32>
    %283 = arith.mulf %282, %278 : vector<8x64xf32>
    %cst_105 = arith.constant 1.42141378 : f32
    %284 = vector.broadcast %cst_105 : f32 to vector<8x64xf32>
    %285 = arith.addf %283, %284 : vector<8x64xf32>
    %286 = arith.mulf %285, %278 : vector<8x64xf32>
    %cst_106 = arith.constant -0.284496725 : f32
    %287 = vector.broadcast %cst_106 : f32 to vector<8x64xf32>
    %288 = arith.addf %286, %287 : vector<8x64xf32>
    %289 = arith.mulf %288, %278 : vector<8x64xf32>
    %cst_107 = arith.constant 0.254829586 : f32
    %290 = vector.broadcast %cst_107 : f32 to vector<8x64xf32>
    %291 = arith.addf %289, %290 : vector<8x64xf32>
    %292 = arith.mulf %291, %278 : vector<8x64xf32>
    %cst_108 = arith.constant 0.000000e+00 : f32
    %293 = vector.broadcast %cst_108 : f32 to vector<8x64xf32>
    %294 = arith.subf %293, %272 : vector<8x64xf32>
    %295 = arith.mulf %294, %272 : vector<8x64xf32>
    %296 = math.exp %295 : vector<8x64xf32>
    %297 = arith.mulf %292, %296 : vector<8x64xf32>
    %cst_109 = arith.constant 1.000000e+00 : f32
    %298 = vector.broadcast %cst_109 : f32 to vector<8x64xf32>
    %299 = arith.subf %298, %297 : vector<8x64xf32>
    %300 = arith.mulf %271, %299 : vector<8x64xf32>
    %cst_110 = arith.constant 1.000000e+00 : f32
    %301 = vector.broadcast %cst_110 : f32 to vector<8x64xf32>
    %302 = arith.addf %301, %300 : vector<8x64xf32>
    %303 = arith.mulf %264, %302 : vector<8x64xf32>
    %304 = arith.truncf %303 : vector<8x64xf32> to vector<8x64xbf16>
    %cst_111 = arith.constant dense<0.000000e+00> : vector<8x32xf32>
    %305 = tpu.matmul %304, %180, %cst_111 {dimension_numbers = #tpu.dot_dimension_numbers<[1], [0], [0], [1], [0, 0, 1, 1], [], []>} : vector<8x64xbf16>, vector<64x32xbf16>, vector<8x32xf32> -> vector<8x32xf32>
    %306 = vector.broadcast %186 : vector<1x32xf32> to vector<8x32xf32>
    %307 = arith.addf %305, %306 : vector<8x32xf32>
    %308 = arith.addf %258, %307 : vector<8x32xf32>
    %cst_112 = arith.constant dense<0.000000e+00> : vector<8xf32>
    %309 = vector.multi_reduction <add>, %308, %cst_112 [1] : vector<8x32xf32> to vector<8xf32>
    %310 = vector.shape_cast %309 : vector<8xf32> to vector<8x1xf32>
    %cst_113 = arith.constant 3.200000e+01 : f32
    %311 = vector.broadcast %cst_113 : f32 to vector<8x1xf32>
    %312 = arith.divf %310, %311 : vector<8x1xf32>
    %313 = vector.broadcast %312 : vector<8x1xf32> to vector<8x32xf32>
    %314 = arith.subf %308, %313 : vector<8x32xf32>
    %315 = arith.mulf %314, %314 : vector<8x32xf32>
    %cst_114 = arith.constant dense<0.000000e+00> : vector<8xf32>
    %316 = vector.multi_reduction <add>, %315, %cst_114 [1] : vector<8x32xf32> to vector<8xf32>
    %317 = vector.shape_cast %316 : vector<8xf32> to vector<8x1xf32>
    %cst_115 = arith.constant 3.200000e+01 : f32
    %318 = vector.broadcast %cst_115 : f32 to vector<8x1xf32>
    %319 = arith.divf %317, %318 : vector<8x1xf32>
    %320 = vector.broadcast %312 : vector<8x1xf32> to vector<8x32xf32>
    %321 = arith.subf %308, %320 : vector<8x32xf32>
    %cst_116 = arith.constant 9.99999996E-13 : f32
    %322 = vector.broadcast %cst_116 : f32 to vector<8x1xf32>
    %323 = arith.addf %319, %322 : vector<8x1xf32>
    %324 = math.rsqrt %323 : vector<8x1xf32>
    %325 = vector.broadcast %324 : vector<8x1xf32> to vector<8x32xf32>
    %326 = arith.mulf %321, %325 : vector<8x32xf32>
    %327 = vector.broadcast %187 : vector<1x32xf32> to vector<8x32xf32>
    %328 = arith.mulf %326, %327 : vector<8x32xf32>
    %329 = vector.broadcast %188 : vector<1x32xf32> to vector<8x32xf32>
    %330 = arith.addf %328, %329 : vector<8x32xf32>
    %c0_117 = arith.constant 0 : index
    %c0_118 = arith.constant 0 : index
    %c0_119 = arith.constant 0 : index
    %331 = vector.load %arg3[%c0_117, %c0_118, %c0_119] : memref<1x8x1xf32, #tpu.memory_space<vmem>>, vector<1x8x1xf32>
    %332 = vector.shape_cast %331 : vector<1x8x1xf32> to vector<8x1xf32>
    %cst_120 = arith.constant 0.000000e+00 : f32
    %333 = vector.broadcast %cst_120 : f32 to vector<8x1xf32>
    %334 = arith.cmpf ogt, %332, %333 : vector<8x1xf32>
    %cst_121 = arith.constant -1.000000e+30 : f32
    %335 = vector.shape_cast %334 : vector<8x1xi1> to vector<8x1xi1>
    %336 = vector.broadcast %335 : vector<8x1xi1> to vector<8x32xi1>
    %337 = vector.broadcast %cst_121 : f32 to vector<8x32xf32>
    %338 = arith.select %336, %330, %337 : vector<8x32xi1>, vector<8x32xf32>
    %cst_122 = arith.constant dense<0xFF800000> : vector<32xf32>
    %339 = vector.multi_reduction <maximumf>, %338, %cst_122 [0] : vector<8x32xf32> to vector<32xf32>
    %340 = vector.shape_cast %339 : vector<32xf32> to vector<1x32xf32>
    %341 = arith.truncf %340 : vector<1x32xf32> to vector<1x32xbf16>
    %c0_123 = arith.constant 0 : index
    %c0_124 = arith.constant 0 : index
    %342 = vector.load %arg11[%c0_123, %c0_124] : memref<32x512xbf16, #tpu.memory_space<vmem>>, vector<32x512xbf16>
    %cst_125 = arith.constant dense<0.000000e+00> : vector<1x512xf32>
    %343 = tpu.matmul %341, %342, %cst_125 {dimension_numbers = #tpu.dot_dimension_numbers<[1], [0], [0], [1], [0, 0, 1, 1], [], []>} : vector<1x32xbf16>, vector<32x512xbf16>, vector<1x512xf32> -> vector<1x512xf32>
    %c0_126 = arith.constant 0 : index
    %c0_127 = arith.constant 0 : index
    %344 = vector.load %arg12[%c0_126, %c0_127] : memref<1x512xf32, #tpu.memory_space<vmem>>, vector<1x512xf32>
    %345 = arith.addf %343, %344 : vector<1x512xf32>
    %cst_128 = arith.constant 5.000000e-01 : f32
    %346 = vector.broadcast %cst_128 : f32 to vector<1x512xf32>
    %347 = arith.mulf %346, %345 : vector<1x512xf32>
    %cst_129 = arith.constant 0.707106769 : f32
    %348 = vector.broadcast %cst_129 : f32 to vector<1x512xf32>
    %349 = arith.mulf %345, %348 : vector<1x512xf32>
    %cst_130 = arith.constant 0.000000e+00 : f32
    %350 = vector.broadcast %cst_130 : f32 to vector<1x512xf32>
    %351 = arith.cmpf oge, %349, %350 : vector<1x512xf32>
    %cst_131 = arith.constant 1.000000e+00 : f32
    %cst_132 = arith.constant -1.000000e+00 : f32
    %352 = vector.broadcast %cst_131 : f32 to vector<1x512xf32>
    %353 = vector.broadcast %cst_132 : f32 to vector<1x512xf32>
    %354 = arith.select %351, %352, %353 : vector<1x512xi1>, vector<1x512xf32>
    %355 = math.absf %349 : vector<1x512xf32>
    %cst_133 = arith.constant 0.327591091 : f32
    %356 = vector.broadcast %cst_133 : f32 to vector<1x512xf32>
    %357 = arith.mulf %356, %355 : vector<1x512xf32>
    %cst_134 = arith.constant 1.000000e+00 : f32
    %358 = vector.broadcast %cst_134 : f32 to vector<1x512xf32>
    %359 = arith.addf %358, %357 : vector<1x512xf32>
    %cst_135 = arith.constant 1.000000e+00 : f32
    %360 = vector.broadcast %cst_135 : f32 to vector<1x512xf32>
    %361 = arith.divf %360, %359 : vector<1x512xf32>
    %cst_136 = arith.constant 1.06140542 : f32
    %362 = vector.broadcast %cst_136 : f32 to vector<1x512xf32>
    %363 = arith.mulf %362, %361 : vector<1x512xf32>
    %cst_137 = arith.constant -1.45315206 : f32
    %364 = vector.broadcast %cst_137 : f32 to vector<1x512xf32>
    %365 = arith.addf %363, %364 : vector<1x512xf32>
    %366 = arith.mulf %365, %361 : vector<1x512xf32>
    %cst_138 = arith.constant 1.42141378 : f32
    %367 = vector.broadcast %cst_138 : f32 to vector<1x512xf32>
    %368 = arith.addf %366, %367 : vector<1x512xf32>
    %369 = arith.mulf %368, %361 : vector<1x512xf32>
    %cst_139 = arith.constant -0.284496725 : f32
    %370 = vector.broadcast %cst_139 : f32 to vector<1x512xf32>
    %371 = arith.addf %369, %370 : vector<1x512xf32>
    %372 = arith.mulf %371, %361 : vector<1x512xf32>
    %cst_140 = arith.constant 0.254829586 : f32
    %373 = vector.broadcast %cst_140 : f32 to vector<1x512xf32>
    %374 = arith.addf %372, %373 : vector<1x512xf32>
    %375 = arith.mulf %374, %361 : vector<1x512xf32>
    %cst_141 = arith.constant 0.000000e+00 : f32
    %376 = vector.broadcast %cst_141 : f32 to vector<1x512xf32>
    %377 = arith.subf %376, %355 : vector<1x512xf32>
    %378 = arith.mulf %377, %355 : vector<1x512xf32>
    %379 = math.exp %378 : vector<1x512xf32>
    %380 = arith.mulf %375, %379 : vector<1x512xf32>
    %cst_142 = arith.constant 1.000000e+00 : f32
    %381 = vector.broadcast %cst_142 : f32 to vector<1x512xf32>
    %382 = arith.subf %381, %380 : vector<1x512xf32>
    %383 = arith.mulf %354, %382 : vector<1x512xf32>
    %cst_143 = arith.constant 1.000000e+00 : f32
    %384 = vector.broadcast %cst_143 : f32 to vector<1x512xf32>
    %385 = arith.addf %384, %383 : vector<1x512xf32>
    %386 = arith.mulf %347, %385 : vector<1x512xf32>
    %387 = arith.truncf %386 : vector<1x512xf32> to vector<1x512xbf16>
    %c0_144 = arith.constant 0 : index
    %c0_145 = arith.constant 0 : index
    %388 = vector.load %arg13[%c0_144, %c0_145] : memref<512x256xbf16, #tpu.memory_space<vmem>>, vector<512x256xbf16>
    %cst_146 = arith.constant dense<0.000000e+00> : vector<1x256xf32>
    %389 = tpu.matmul %387, %388, %cst_146 {dimension_numbers = #tpu.dot_dimension_numbers<[1], [0], [0], [1], [0, 0, 1, 1], [], []>} : vector<1x512xbf16>, vector<512x256xbf16>, vector<1x256xf32> -> vector<1x256xf32>
    %c0_147 = arith.constant 0 : index
    %c0_148 = arith.constant 0 : index
    %390 = vector.load %arg14[%c0_147, %c0_148] : memref<1x256xf32, #tpu.memory_space<vmem>>, vector<1x256xf32>
    %391 = arith.addf %389, %390 : vector<1x256xf32>
    %cst_149 = arith.constant 5.000000e-01 : f32
    %392 = vector.broadcast %cst_149 : f32 to vector<1x256xf32>
    %393 = arith.mulf %392, %391 : vector<1x256xf32>
    %cst_150 = arith.constant 0.707106769 : f32
    %394 = vector.broadcast %cst_150 : f32 to vector<1x256xf32>
    %395 = arith.mulf %391, %394 : vector<1x256xf32>
    %cst_151 = arith.constant 0.000000e+00 : f32
    %396 = vector.broadcast %cst_151 : f32 to vector<1x256xf32>
    %397 = arith.cmpf oge, %395, %396 : vector<1x256xf32>
    %cst_152 = arith.constant 1.000000e+00 : f32
    %cst_153 = arith.constant -1.000000e+00 : f32
    %398 = vector.broadcast %cst_152 : f32 to vector<1x256xf32>
    %399 = vector.broadcast %cst_153 : f32 to vector<1x256xf32>
    %400 = arith.select %397, %398, %399 : vector<1x256xi1>, vector<1x256xf32>
    %401 = math.absf %395 : vector<1x256xf32>
    %cst_154 = arith.constant 0.327591091 : f32
    %402 = vector.broadcast %cst_154 : f32 to vector<1x256xf32>
    %403 = arith.mulf %402, %401 : vector<1x256xf32>
    %cst_155 = arith.constant 1.000000e+00 : f32
    %404 = vector.broadcast %cst_155 : f32 to vector<1x256xf32>
    %405 = arith.addf %404, %403 : vector<1x256xf32>
    %cst_156 = arith.constant 1.000000e+00 : f32
    %406 = vector.broadcast %cst_156 : f32 to vector<1x256xf32>
    %407 = arith.divf %406, %405 : vector<1x256xf32>
    %cst_157 = arith.constant 1.06140542 : f32
    %408 = vector.broadcast %cst_157 : f32 to vector<1x256xf32>
    %409 = arith.mulf %408, %407 : vector<1x256xf32>
    %cst_158 = arith.constant -1.45315206 : f32
    %410 = vector.broadcast %cst_158 : f32 to vector<1x256xf32>
    %411 = arith.addf %409, %410 : vector<1x256xf32>
    %412 = arith.mulf %411, %407 : vector<1x256xf32>
    %cst_159 = arith.constant 1.42141378 : f32
    %413 = vector.broadcast %cst_159 : f32 to vector<1x256xf32>
    %414 = arith.addf %412, %413 : vector<1x256xf32>
    %415 = arith.mulf %414, %407 : vector<1x256xf32>
    %cst_160 = arith.constant -0.284496725 : f32
    %416 = vector.broadcast %cst_160 : f32 to vector<1x256xf32>
    %417 = arith.addf %415, %416 : vector<1x256xf32>
    %418 = arith.mulf %417, %407 : vector<1x256xf32>
    %cst_161 = arith.constant 0.254829586 : f32
    %419 = vector.broadcast %cst_161 : f32 to vector<1x256xf32>
    %420 = arith.addf %418, %419 : vector<1x256xf32>
    %421 = arith.mulf %420, %407 : vector<1x256xf32>
    %cst_162 = arith.constant 0.000000e+00 : f32
    %422 = vector.broadcast %cst_162 : f32 to vector<1x256xf32>
    %423 = arith.subf %422, %401 : vector<1x256xf32>
    %424 = arith.mulf %423, %401 : vector<1x256xf32>
    %425 = math.exp %424 : vector<1x256xf32>
    %426 = arith.mulf %421, %425 : vector<1x256xf32>
    %cst_163 = arith.constant 1.000000e+00 : f32
    %427 = vector.broadcast %cst_163 : f32 to vector<1x256xf32>
    %428 = arith.subf %427, %426 : vector<1x256xf32>
    %429 = arith.mulf %400, %428 : vector<1x256xf32>
    %cst_164 = arith.constant 1.000000e+00 : f32
    %430 = vector.broadcast %cst_164 : f32 to vector<1x256xf32>
    %431 = arith.addf %430, %429 : vector<1x256xf32>
    %432 = arith.mulf %393, %431 : vector<1x256xf32>
    %433 = arith.truncf %432 : vector<1x256xf32> to vector<1x256xbf16>
    %c0_165 = arith.constant 0 : index
    %c0_166 = arith.constant 0 : index
    %434 = vector.load %arg15[%c0_165, %c0_166] : memref<256x128xbf16, #tpu.memory_space<vmem>>, vector<256x128xbf16>
    %cst_167 = arith.constant dense<0.000000e+00> : vector<1x128xf32>
    %435 = tpu.matmul %433, %434, %cst_167 {dimension_numbers = #tpu.dot_dimension_numbers<[1], [0], [0], [1], [0, 0, 1, 1], [], []>} : vector<1x256xbf16>, vector<256x128xbf16>, vector<1x128xf32> -> vector<1x128xf32>
    %c0_168 = arith.constant 0 : index
    %c0_169 = arith.constant 0 : index
    %436 = vector.load %arg16[%c0_168, %c0_169] : memref<1x128xf32, #tpu.memory_space<vmem>>, vector<1x128xf32>
    %437 = arith.addf %435, %436 : vector<1x128xf32>
    %cst_170 = arith.constant 0.000000e+00 : f32
    %438 = vector.broadcast %cst_170 : f32 to vector<1x128xf32>
    %439 = arith.subf %438, %437 : vector<1x128xf32>
    %440 = math.exp %439 : vector<1x128xf32>
    %cst_171 = arith.constant 1.000000e+00 : f32
    %441 = vector.broadcast %cst_171 : f32 to vector<1x128xf32>
    %442 = arith.addf %441, %440 : vector<1x128xf32>
    %cst_172 = arith.constant 1.000000e+00 : f32
    %443 = vector.broadcast %cst_172 : f32 to vector<1x128xf32>
    %444 = arith.divf %443, %442 : vector<1x128xf32>
    %445 = vector.shape_cast %444 : vector<1x128xf32> to vector<1x1x128xf32>
    %c0_173 = arith.constant 0 : index
    %c0_174 = arith.constant 0 : index
    %c0_175 = arith.constant 0 : index
    %446 = vector.load %arg17[%c0_173, %c0_174, %c0_175] : memref<1x1x128xf32, #tpu.memory_space<vmem>>, vector<1x1x128xf32>
    tpu.vector_store %arg17[%c0_173, %c0_174, %c0_175], %445 {strides = array<i32>} : memref<1x1x128xf32, #tpu.memory_space<vmem>>, vector<1x1x128xf32>,
    return
  }
  func.func @transform_0(%arg0: i32) -> (i32, i32, i32) {
    %c0_i32 = arith.constant 0 : i32
    %c0_i32_0 = arith.constant 0 : i32
    %c0_i32_1 = arith.constant 0 : i32
    return %arg0, %c0_i32, %c0_i32_0 : i32, i32, i32
  }
  func.func @transform_1(%arg0: i32) -> (i32, i32, i32) {
    %c0_i32 = arith.constant 0 : i32
    %c0_i32_0 = arith.constant 0 : i32
    %c0_i32_1 = arith.constant 0 : i32
    return %arg0, %c0_i32, %c0_i32_0 : i32, i32, i32
  }
  func.func @transform_2(%arg0: i32) -> (i32, i32, i32) {
    %c0_i32 = arith.constant 0 : i32
    %c0_i32_0 = arith.constant 0 : i32
    %c0_i32_1 = arith.constant 0 : i32
    return %arg0, %c0_i32, %c0_i32_0 : i32, i32, i32
  }
  func.func @transform_3(%arg0: i32) -> (i32, i32, i32) {
    %c0_i32 = arith.constant 0 : i32
    %c0_i32_0 = arith.constant 0 : i32
    %c0_i32_1 = arith.constant 0 : i32
    %c0_i32_2 = arith.constant 0 : i32
    return %c0_i32, %c0_i32_0, %c0_i32_1 : i32, i32, i32
  }
  func.func @transform_4(%arg0: i32) -> (i32, i32, i32) {
    %c0_i32 = arith.constant 0 : i32
    %c0_i32_0 = arith.constant 0 : i32
    %c0_i32_1 = arith.constant 0 : i32
    %c0_i32_2 = arith.constant 0 : i32
    return %c0_i32, %c0_i32_0, %c0_i32_1 : i32, i32, i32
  }
  func.func @transform_5(%arg0: i32) -> (i32, i32, i32) {
    %c0_i32 = arith.constant 0 : i32
    %c0_i32_0 = arith.constant 0 : i32
    %c0_i32_1 = arith.constant 0 : i32
    %c0_i32_2 = arith.constant 0 : i32
    return %c0_i32, %c0_i32_0, %c0_i32_1 : i32, i32, i32
  }
  func.func @transform_6(%arg0: i32) -> (i32, i32, i32) {
    %c0_i32 = arith.constant 0 : i32
    %c0_i32_0 = arith.constant 0 : i32
    %c0_i32_1 = arith.constant 0 : i32
    %c0_i32_2 = arith.constant 0 : i32
    return %c0_i32, %c0_i32_0, %c0_i32_1 : i32, i32, i32
  }
  func.func @transform_7(%arg0: i32) -> (i32, i32, i32) {
    %c0_i32 = arith.constant 0 : i32
    %c0_i32_0 = arith.constant 0 : i32
    %c0_i32_1 = arith.constant 0 : i32
    %c0_i32_2 = arith.constant 0 : i32
    return %c0_i32, %c0_i32_0, %c0_i32_1 : i32, i32, i32
  }
  func.func @transform_8(%arg0: i32) -> (i32, i32, i32) {
    %c0_i32 = arith.constant 0 : i32
    %c0_i32_0 = arith.constant 0 : i32
    %c0_i32_1 = arith.constant 0 : i32
    %c0_i32_2 = arith.constant 0 : i32
    return %c0_i32, %c0_i32_0, %c0_i32_1 : i32, i32, i32
  }
  func.func @transform_9(%arg0: i32) -> (i32, i32, i32) {
    %c0_i32 = arith.constant 0 : i32
    %c0_i32_0 = arith.constant 0 : i32
    %c0_i32_1 = arith.constant 0 : i32
    %c0_i32_2 = arith.constant 0 : i32
    return %c0_i32, %c0_i32_0, %c0_i32_1 : i32, i32, i32
  }
  func.func @transform_10(%arg0: i32) -> (i32, i32) {
    %c0_i32 = arith.constant 0 : i32
    %c0_i32_0 = arith.constant 0 : i32
    %c0_i32_1 = arith.constant 0 : i32
    return %c0_i32, %c0_i32_0 : i32, i32
  }
  func.func @transform_11(%arg0: i32) -> (i32, i32) {
    %c0_i32 = arith.constant 0 : i32
    %c0_i32_0 = arith.constant 0 : i32
    %c0_i32_1 = arith.constant 0 : i32
    return %c0_i32, %c0_i32_0 : i32, i32
  }
  func.func @transform_12(%arg0: i32) -> (i32, i32) {
    %c0_i32 = arith.constant 0 : i32
    %c0_i32_0 = arith.constant 0 : i32
    %c0_i32_1 = arith.constant 0 : i32
    return %c0_i32, %c0_i32_0 : i32, i32
  }
  func.func @transform_13(%arg0: i32) -> (i32, i32) {
    %c0_i32 = arith.constant 0 : i32
    %c0_i32_0 = arith.constant 0 : i32
    %c0_i32_1 = arith.constant 0 : i32
    return %c0_i32, %c0_i32_0 : i32, i32
  }
  func.func @transform_14(%arg0: i32) -> (i32, i32) {
    %c0_i32 = arith.constant 0 : i32
    %c0_i32_0 = arith.constant 0 : i32
    %c0_i32_1 = arith.constant 0 : i32
    return %c0_i32, %c0_i32_0 : i32, i32
  }
  func.func @transform_15(%arg0: i32) -> (i32, i32) {
    %c0_i32 = arith.constant 0 : i32
    %c0_i32_0 = arith.constant 0 : i32
    %c0_i32_1 = arith.constant 0 : i32
    return %c0_i32, %c0_i32_0 : i32, i32
  }
  func.func @transform_16(%arg0: i32) -> (i32, i32, i32) {
    %c0_i32 = arith.constant 0 : i32
    %c0_i32_0 = arith.constant 0 : i32
    %c0_i32_1 = arith.constant 0 : i32
    return %arg0, %c0_i32, %c0_i32_0 : i32, i32, i32
  }
}

</mosaic_0001>

<bundles_post_ra>
// kernel: tpu_custom_call.1
= control target key start
LH: loop header
LB: loop body
LE: loop exit
PB: predicated region body
PF: predicated region fallthrough
CT: control target
= control target key end

     0   :  { %s5128_s0 = inlined_call_operand.hbm [shape: f32[2,8,32], index: 0, kind: input, shape index: {}]   ;;  %s5129_s1 = inlined_call_operand.vmem [shape: f32[2,1,8], index: 1, kind: input, shape index: {}]   ;;  %s5130_s2 = inlined_call_operand.vmem [shape: f32[2,8,1], index: 2, kind: input, shape index: {}]   ;;  %s5131_s3 = inlined_call_operand.hbm [shape: bf16[2,32,96], index: 3, kind: input, shape index: {}]   ;;  %s5132_s4 = inlined_call_operand.hbm [shape: f32[2,1,96], index: 4, kind: input, shape index: {}]   ;;  %s5133_s5 = inlined_call_operand.hbm [shape: bf16[2,32,32], index: 5, kind: input, shape index: {}]   ;;  %s5134_s6 = inlined_call_operand.hbm [shape: bf16[2,32,64], index: 6, kind: input, shape index: {}]   ;;  %s5135_s7 = inlined_call_operand.hbm [shape: f32[2,1,64], index: 7, kind: input, shape index: {}]   ;;  %s5136_s8 = inlined_call_operand.vmem [shape: bf16[2,64,32], index: 8, kind: input, shape index: {}]   ;;  %s5137_s9 = inlined_call_operand.vmem [shape: f32[2,6,32], index: 9, kind: input, shape index: {}]   ;;  %s5138_s10 = inlined_call_operand.vmem [shape: bf16[32,512], index: 10, kind: input, shape index: {}]   ;;  %s5139_s11 = inlined_call_operand.hbm [shape: f32[1,512], index: 11, kind: input, shape index: {}]   ;;  %s5140_s12 = inlined_call_operand.hbm [shape: bf16[512,256], index: 12, kind: input, shape index: {}]   ;;  %s5141_s13 = inlined_call_operand.hbm [shape: f32[1,256], index: 13, kind: input, shape index: {}]   ;;  %s5142_s14 = inlined_call_operand.vmem [shape: bf16[256,128], index: 14, kind: input, shape index: {}]   ;;  %s5143_s15 = inlined_call_operand.vmem [shape: f32[1,128], index: 15, kind: input, shape index: {}]   ;;  %s5144_s16 = inlined_call_operand.hbm [shape: f32[2,1,128], index: 16, kind: output, shape index: {}]  }
   0x1   :  { %5160 = sst [smem:[#allocation24_spill]] %s5128_s0 }
   0x2   :  { %5161 = sst [smem:[#allocation25_spill]] %s5129_s1 }
   0x3   :  { %5162 = sst [smem:[#allocation26_spill]] %s5130_s2 }
   0x4   :  { %5163 = sst [smem:[#allocation27_spill]] %s5131_s3 }
   0x5   :  { %5164 = sst [smem:[#allocation28_spill]] %s5132_s4 }
   0x6   :  { %5165 = sst [smem:[#allocation29_spill]] %s5136_s8 }
   0x7   :  { %5166 = sst [smem:[#allocation30_spill]] %s5137_s9 }
   0x8   :  { %5167 = sst [smem:[#allocation31_spill]] %s5138_s10 }
   0x9   :  { %5168 = sst [smem:[#allocation32_spill]] %s5142_s14 }
   0xa   :  { %5169 = sst [smem:[#allocation33_spill]] %s5143_s15 }
   0xb   :  { %5170 = sst [smem:[#allocation34_spill]] %s5144_s16 }
   0xc   :  { %21 = vsyncpa [#allocation3], 0 }
   0xd   :  { %23 = vsyncpa [#allocation3 + $0x1], 0 }
   0xe   :  { %24 = vsyncpa [#allocation6], 0 }
   0xf   :  { %25 = vsyncpa [#allocation9], 0 }
  0x10   :  { %26 = vsyncpa [#allocation12], 0 }
  0x11   :  { %27 = vsyncpa [#allocation15], 0 }
  0x12   :  { %28 = vsyncpa [#allocation4], 0 }
  0x13   :  { %30 = vsyncpa [#allocation4 + $0x1], 0  ;;  %s4401_s21 = smov 0   ;;  %s4403_s22 = smov 0  }
  0x14   :  { %s4405_s23 = smov 0   ;;  %s4407_s24 = smov 0  }
  0x15 LB: > { %s4292_s25 = smov [#allocation5]   ;;  %s4422_s27 = sadd.s32 4294967295, %s4290_s24   ;;  %s4290_s24 = sphi %s4407_s24, %s5211_s24   ;;  %s4286_s23 = sphi %s4405_s23, %s5210_s23   ;;  %s4282_s22 = sphi %s4403_s22, %s5209_s22   ;;  %s4278_s21 = sphi %s4401_s21, %s5208_s21  }
  0x16   : > { %s430_s26 = sshll.u32 %s4292_s25, 4  ;;  %p3256_p0 = scmp.ge.s32.totalorder %s4290_s24, 1  ;;  %s4427_s26 = int_to_ptr.vmem [resolvable:$true] %s430_s26 }
  0x17   : > { %p5151_p1 = scmp.eq.s32.totalorder %s4422_s27, 0  ;;  %p418_p2 = scmp.lt.s32.totalorder %s4290_s24, 3 }
  0x18   : > { %s4293_s29 = smov [#allocation8]   ;;  %s4294_s17 = smov [#allocation11]  }
  0x19   : > { %p4429_p3 = pnand %p3256_p0, %p418_p2  ;;  %s456_s30 = sshll.u32 %s4293_s29, 4  ;;  %s4442_s30 = int_to_ptr.vmem [resolvable:$true] %s456_s30 }
  0x1a   : > { %s4444_s18 = sshll.u32 %s4294_s17, 4  ;;  %s5173_s3 = sld [smem:[#allocation27_spill]]  ;;  %s483_s18 = int_to_ptr.vmem [resolvable:$true] %s4444_s18 }
  0x1b   : > { %s5171_s28 = scalar_select %p4429_p3, 1, 0 }
  0x1c   : > { %p3643_p5 = pneg %p4429_p3 }
  0x1e   : > { %p4438_p6 = pnand %p3643_p5, %p5151_p1 }
  0x20   : > { %s3954_s25 = scalar_lea.hbm %s5173_s3, 512  ;;  %p4454_p8 = pneg %p4438_p6 }
  0x21   : > { %p3955_p7 = scmp.ne.s32.totalorder %s5173_s3, %s3954_s25  ;;  %p3961_p11 = scmp.lt.u32.totalorder %s3954_s25, %s5173_s3 }
  0x23   : > { %p3957_p9 = pnand %p4454_p8, %p3955_p7 }
  0x25   : > { %p3958_p10 = pneg %p3957_p9 }
  0x27   : > { %p3963_p12 = pnand %p3961_p11, %p3958_p10 }
  0x29   : > { %3966 = shalt.err (!%p3963_p12)
}
  0x2a   : > { %s3967_s15 = scalar_lea.vmem %s4427_s26, 512  ;;  %p3975_p5 = scmp.lt.s32.totalorder %s4427_s26, %s4427_s26 }
  0x2b   : > { %p3968_p13 = scmp.ne.s32.totalorder %s4427_s26, %s3967_s15  ;;  %p3976_p4 = scmp.lt.s32.totalorder %s3967_s15, %s3967_s15 }
  0x2d   : > { %p3970_p0 = pnand %p3968_p13, %p4454_p8  ;;  %p3977_p7 = por %p3976_p4, %p3975_p5 }
  0x2f   : > { %p3971_p2 = pneg %p3970_p0 }
  0x31   : > { %p3978_p9 = pnand %p3977_p7, %p3971_p2 }
  0x33   : > { %3981 = shalt.err (!%p3978_p9)
}
  0x34   : > { %s5153_s16 = smov 64   ;;  %s5154_s14 = smov 4  }
  0x35   : > { %3646 = dma.hbm_to_vmem [thread:$0]  (!%p4438_p6), %s5173_s3, 512, %s4427_s26, [#allocation6], %s5153_s16, %s5153_s16, %s5154_s14  }
  0x36   : > { %s3982_s15 = scalar_lea.hbm %s5133_s5, 512 }
  0x37   : > { %p3983_p4 = scmp.ne.s32.totalorder %s5133_s5, %s3982_s15  ;;  %p3989_p12 = scmp.lt.u32.totalorder %s3982_s15, %s5133_s5 }
  0x39   : > { %p3985_p10 = pnand %p3983_p4, %p4454_p8 }
  0x3b   : > { %p3986_p11 = pneg %p3985_p10 }
  0x3d   : > { %p3991_p13 = pnand %p3989_p12, %p3986_p11 }
  0x3f   : > { %3994 = shalt.err (!%p3991_p13)
}
  0x40   : > { %s3995_s26 = scalar_lea.vmem %s4442_s30, 512  ;;  %p4003_p7 = scmp.lt.s32.totalorder %s4442_s30, %s4442_s30 }
  0x41   : > { %p3996_p0 = scmp.ne.s32.totalorder %s4442_s30, %s3995_s26  ;;  %p4004_p9 = scmp.lt.s32.totalorder %s3995_s26, %s3995_s26 }
  0x43   : > { %p3998_p2 = pnand %p3996_p0, %p4454_p8  ;;  %p4005_p4 = por %p4004_p9, %p4003_p7 }
  0x45   : > { %p3999_p5 = pneg %p3998_p2 }
  0x47   : > { %p4006_p10 = pnand %p4005_p4, %p3999_p5 }
  0x49   : > { %4009 = shalt.err (!%p4006_p10)
}
  0x4a   : > { %3652 = dma.hbm_to_vmem [thread:$0]  (!%p4438_p6), %s5133_s5, 512, %s4442_s30, [#allocation9], %s5153_s16, %s5153_s16, %s5154_s14  }
  0x4b   : > { %s4010_s19 = scalar_lea.hbm %s5135_s7, 32 }
  0x4c   : > { %p4011_p11 = scmp.ne.s32.totalorder %s5135_s7, %s4010_s19  ;;  %p4017_p0 = scmp.lt.u32.totalorder %s4010_s19, %s5135_s7 }
  0x4e   : > { %p4013_p12 = pnand %p4011_p11, %p4454_p8 }
  0x50   : > { %p4014_p13 = pneg %p4013_p12 }
  0x52   : > { %p4019_p2 = pnand %p4017_p0, %p4014_p13 }
  0x54   : > { %4022 = shalt.err (!%p4019_p2)
}
  0x55   : > { %s4023_s26 = scalar_lea.vmem %s483_s18, 32  ;;  %p4031_p4 = scmp.lt.s32.totalorder %s483_s18, %s483_s18 }
  0x56   : > { %p4024_p5 = scmp.ne.s32.totalorder %s483_s18, %s4023_s26  ;;  %p4032_p10 = scmp.lt.s32.totalorder %s4023_s26, %s4023_s26 }
  0x58   : > { %p4026_p7 = pnand %p4024_p5, %p4454_p8  ;;  %p4033_p1 = por %p4032_p10, %p4031_p4 }
  0x5a   : > { %p4027_p9 = pneg %p4026_p7 }
  0x5c   : > { %p4034_p3 = pnand %p4033_p1, %p4027_p9 }
  0x5e   : > { %4037 = shalt.err (!%p4034_p3)
}
  0x5f   : > { %s5155_s30 = smov 16   ;;  %s5156_s2 = smov 1  }
  0x60   : > { %3658 = dma.hbm_to_vmem [thread:$0]  (!%p4438_p6), %s5135_s7, 32, %s483_s18, [#allocation12], %s5155_s30, %s5155_s30, %s5156_s2  }
  0x61   : > { %s4299_s10 = smov [#allocation14]   ;;  %s4038_s17 = scalar_lea.hbm %s5140_s12, 8192 }
  0x62   : > { %s515_s19 = sshll.u32 %s4299_s10, 4  ;;  %p4039_p1 = scmp.ne.s32.totalorder %s5140_s12, %s4038_s17  ;;  %s516_s19 = int_to_ptr.vmem [resolvable:$true] %s515_s19 }
  0x63   : > { %p4045_p12 = scmp.lt.u32.totalorder %s4038_s17, %s5140_s12 }
  0x64   : > { %p4041_p3 = pnand %p4039_p1, %p4454_p8 }
  0x66   : > { %p4042_p11 = pneg %p4041_p3 }
  0x68   : > { %p4047_p13 = pnand %p4045_p12, %p4042_p11 }
  0x6a   : > { %4050 = shalt.err (!%p4047_p13)
}
  0x6b   : > { %s4051_s18 = scalar_lea.vmem %s516_s19, 8192  ;;  %p4059_p7 = scmp.lt.s32.totalorder %s516_s19, %s516_s19 }
  0x6c   : > { %p4052_p0 = scmp.ne.s32.totalorder %s516_s19, %s4051_s18  ;;  %p4060_p9 = scmp.lt.s32.totalorder %s4051_s18, %s4051_s18 }
  0x6e   : > { %p4054_p2 = pnand %p4052_p0, %p4454_p8  ;;  %p4061_p4 = por %p4060_p9, %p4059_p7 }
  0x70   : > { %p4055_p5 = pneg %p4054_p2 }
  0x72   : > { %p4062_p10 = pnand %p4061_p4, %p4055_p5 }
  0x74   : > { %4065 = shalt.err (!%p4062_p10)
}
  0x75   : > { %s4300_s8 = smov 128   ;;  %s4301_s9 = smov 8  }
  0x76   : > { %3664 = dma.hbm_to_vmem [thread:$0]  (!%p4438_p6), %s5140_s12, 8192, %s516_s19, [#allocation15], %s4300_s8, %s4300_s8, %s4301_s9  }
  0x77   : > { %s4302_s10 = smov [#allocation7]   ;;  %s4303_s25 = smov [#allocation10]  }
  0x78   : > { %s443_s20 = sshll.u32 %s4302_s10, 4  ;;  %s469_s17 = sshll.u32 %s4303_s25, 4  ;;  %s444_s20 = int_to_ptr.vmem [resolvable:$true] %s443_s20  ;;  %s4544_s17 = int_to_ptr.vmem [resolvable:$true] %s469_s17 }
  0x79   : > { %s5175_s4 = sld [smem:[#allocation28_spill]] }
  0x7f   : > { %s4066_s18 = scalar_lea.hbm %s5175_s4, 32 }
  0x80   : > { %p4067_p1 = scmp.ne.s32.totalorder %s5175_s4, %s4066_s18  ;;  %p4073_p12 = scmp.lt.u32.totalorder %s4066_s18, %s5175_s4 }
  0x82   : > { %p4069_p3 = pnand %p4067_p1, %p4454_p8 }
  0x84   : > { %p4070_p11 = pneg %p4069_p3 }
  0x86   : > { %p4075_p13 = pnand %p4073_p12, %p4070_p11 }
  0x88   : > { %4078 = shalt.err (!%p4075_p13)
}
  0x89   : > { %s4079_s8 = scalar_lea.vmem %s444_s20, 32  ;;  %p4087_p7 = scmp.lt.s32.totalorder %s444_s20, %s444_s20 }
  0x8a   : > { %p4080_p0 = scmp.ne.s32.totalorder %s444_s20, %s4079_s8  ;;  %p4088_p9 = scmp.lt.s32.totalorder %s4079_s8, %s4079_s8 }
  0x8c   : > { %p4082_p2 = pnand %p4080_p0, %p4454_p8  ;;  %p4089_p4 = por %p4088_p9, %p4087_p7 }
  0x8e   : > { %p4083_p5 = pneg %p4082_p2 }
  0x90   : > { %p4090_p10 = pnand %p4089_p4, %p4083_p5 }
  0x92   : > { %4093 = shalt.err (!%p4090_p10)
}
  0x93   : > { %s5176_s30 = smov 1   ;;  %s5177_s2 = smov 16  }
  0x94   : > { %3649 = dma.hbm_to_vmem [thread:$0]  (!%p4438_p6), %s5175_s4, 32, %s444_s20, [#allocation6], %s5177_s2, %s5177_s2, %s5176_s30  }
  0x95   : > { %s4094_s15 = scalar_lea.hbm %s5134_s6, 512 }
  0x96   : > { %p4095_p1 = scmp.ne.s32.totalorder %s5134_s6, %s4094_s15  ;;  %p4101_p12 = scmp.lt.u32.totalorder %s4094_s15, %s5134_s6 }
  0x98   : > { %p4097_p3 = pnand %p4095_p1, %p4454_p8 }
  0x9a   : > { %p4098_p11 = pneg %p4097_p3 }
  0x9c   : > { %p4103_p13 = pnand %p4101_p12, %p4098_p11 }
  0x9e   : > { %4106 = shalt.err (!%p4103_p13)
}
  0x9f   : > { %s4107_s20 = scalar_lea.vmem %s4544_s17, 512  ;;  %p4115_p7 = scmp.lt.s32.totalorder %s4544_s17, %s4544_s17 }
  0xa0   : > { %p4108_p0 = scmp.ne.s32.totalorder %s4544_s17, %s4107_s20  ;;  %p4116_p9 = scmp.lt.s32.totalorder %s4107_s20, %s4107_s20 }
  0xa2   : > { %p4110_p2 = pnand %p4108_p0, %p4454_p8  ;;  %p4117_p4 = por %p4116_p9, %p4115_p7 }
  0xa4   : > { %p4111_p5 = pneg %p4110_p2 }
  0xa6   : > { %p4118_p10 = pnand %p4117_p4, %p4111_p5 }
  0xa8   : > { %4121 = shalt.err (!%p4118_p10)
}
  0xa9   : > { %s5178_s8 = smov 4   ;;  %s5179_s30 = smov 64  }
  0xaa   : > { %3655 = dma.hbm_to_vmem [thread:$0]  (!%p4438_p6), %s5134_s6, 512, %s4544_s17, [#allocation9], %s5179_s30, %s5179_s30, %s5178_s8  }
  0xab   : > { %s4304_s14 = smov [#allocation13]   ;;  %s4305_s25 = smov [#allocation16]  }
  0xac   : > { %s505_s10 = sshll.u32 %s4304_s14, 4  ;;  %s529_s15 = sshll.u32 %s4305_s25, 4  ;;  %s506_s10 = int_to_ptr.vmem [resolvable:$true] %s505_s10  ;;  %s4593_s15 = int_to_ptr.vmem [resolvable:$true] %s529_s15 }
  0xad   : > { %s4122_s16 = scalar_lea.hbm %s5139_s11, 64 }
  0xae   : > { %p4123_p1 = scmp.ne.s32.totalorder %s5139_s11, %s4122_s16  ;;  %p4129_p12 = scmp.lt.u32.totalorder %s4122_s16, %s5139_s11 }
  0xb0   : > { %p4125_p3 = pnand %p4123_p1, %p4454_p8 }
  0xb2   : > { %p4126_p11 = pneg %p4125_p3 }
  0xb4   : > { %p4131_p13 = pnand %p4129_p12, %p4126_p11 }
  0xb6   : > { %4134 = shalt.err (!%p4131_p13)
}
  0xb7   : > { %s4135_s8 = scalar_lea.vmem %s506_s10, 64  ;;  %p4143_p7 = scmp.lt.s32.totalorder %s506_s10, %s506_s10 }
  0xb8   : > { %p4136_p0 = scmp.ne.s32.totalorder %s506_s10, %s4135_s8  ;;  %p4144_p9 = scmp.lt.s32.totalorder %s4135_s8, %s4135_s8 }
  0xba   : > { %p4138_p2 = pnand %p4136_p0, %p4454_p8  ;;  %p4145_p4 = por %p4144_p9, %p4143_p7 }
  0xbc   : > { %p4139_p5 = pneg %p4138_p2 }
  0xbe   : > { %p4146_p10 = pnand %p4145_p4, %p4139_p5 }
  0xc0   : > { %4149 = shalt.err (!%p4146_p10)
}
  0xc1   : > { %3661 = dma.hbm_to_vmem [thread:$0]  (!%p4438_p6), %s5139_s11, 64, %s506_s10, [#allocation12]  }
  0xc2   : > { %s4150_s26 = scalar_lea.hbm %s5141_s13, 32 }
  0xc3   : > { %p4151_p1 = scmp.ne.s32.totalorder %s5141_s13, %s4150_s26  ;;  %p4157_p12 = scmp.lt.u32.totalorder %s4150_s26, %s5141_s13 }
  0xc5   : > { %p4153_p3 = pnand %p4151_p1, %p4454_p8 }
  0xc7   : > { %p4154_p11 = pneg %p4153_p3 }
  0xc9   : > { %p4159_p13 = pnand %p4157_p12, %p4154_p11 }
  0xcb   : > { %4162 = shalt.err (!%p4159_p13)
}
  0xcc   : > { %s4163_s10 = scalar_lea.vmem %s4593_s15, 32  ;;  %p4171_p7 = scmp.lt.s32.totalorder %s4593_s15, %s4593_s15 }
  0xcd   : > { %p4164_p0 = scmp.ne.s32.totalorder %s4593_s15, %s4163_s10  ;;  %p4172_p9 = scmp.lt.s32.totalorder %s4163_s10, %s4163_s10 }
  0xcf   : > { %p4166_p2 = pnand %p4164_p0, %p4454_p8  ;;  %p4173_p4 = por %p4172_p9, %p4171_p7 }
  0xd1   : > { %p4167_p5 = pneg %p4166_p2 }
  0xd3   : > { %p4174_p10 = pnand %p4173_p4, %p4167_p5 }
  0xd5   : > { %4177 = shalt.err (!%p4174_p10)
}
  0xd6   : > { %3667 = dma.hbm_to_vmem [thread:$0]  (!%p4438_p6), %s5141_s13, 32, %s4593_s15, [#allocation15]  }
  0xd7   : > { %s3255_s0 = sadd.s32 4294967294, %s4290_s24   ;;  %s4638_s29 = sadd.s32 1, %s4290_s24  }
  0xd8   : > { %s40_s8 = ssub.s32 %s4290_s24, %s4638_s29  ;;  %s43_s30 = sadd.s32 1, %s4286_s23 }
  0xd9   : > { %p41_p8 = scmp.eq.s32.totalorder %s40_s8, 0  ;;  %p50_p1 = scmp.ne.s32.totalorder %s4286_s23, %s4282_s22 }
  0xda   : > { %p51_p3 = scmp.eq.s32.totalorder %s4290_s24, 0  ;;  %p56_p11 = scmp.ne.s32.totalorder %s4282_s22, %s4278_s21 }
  0xdb   : > { %s4649_s9 = scalar_select %p41_p8, %s4286_s23, %s43_s30  }
  0xdc   : > { %p4651_p12 = por %p51_p3, %p50_p1  ;;  %p5181_p13 = scmp.eq.s32.totalorder %s4422_s27, 0 }
  0xdd   : > { %p405_p0 = scmp.eq.s32.totalorder %s4422_s27, 1  ;;  %p411_p2 = scmp.eq.s32.totalorder %s3255_s0, 1 }
  0xde   : > { %p4657_p6 = por %p5181_p13, %p56_p11  ;;  %p3684_p5 = scmp.lt.s32.totalorder %s4290_s24, 2 }
  0xdf   : > { %s546_s25 = sand.u32 1, %s4286_s23   ;;  %p4664_p7 = por %p405_p0, %p50_p1 }
  0xe0   : > { %p4668_p9 = por %p411_p2, %p56_p11  ;;  %s3266_s16 = sshll.u32 %s546_s25, 3 }
  0xe1   : > { %s5183_s26 = scalar_select %p4664_p7, 1, 0 }
  0xe2   : > { %s5184_s18 = scalar_select %p4668_p9, 1, 0 }
  0xe3   : > { %s3267_s19 = sshll.u32 %s4290_s24, 7  ;;  %s5185_s2 = sld [smem:[#allocation24_spill]] }
  0xe4   : > { %s550_s0 = scalar_lea.vmem [#allocation2], %s3266_s16  ;;  %p4682_p4 = pnand %p3684_p5, %p4651_p12 }
  0xe5   : > { %s557_s8 = sshll.u32 %s550_s0, 4  ;;  %s547_s3 = scalar_lea.sflag [#allocation3], %s546_s25  ;;  %s4678_s8 = int_to_ptr.vmem [resolvable:$true] %s557_s8 }
  0xe6   : > { %p4180_p8 = pneg %p4682_p4 }
  0xe9   : > { %s4676_s17 = scalar_lea.hbm %s5185_s2, %s3267_s19  ;;  %s4183_s20 = scalar_lea.hbm %s5185_s2, 256 }
  0xea   : > { %s4178_s4 = scalar_lea.hbm %s4676_s17, 128  ;;  %p4184_p11 = scmp.lt.u32.totalorder %s4676_s17, %s5185_s2 }
  0xeb   : > { %p4179_p10 = scmp.ne.s32.totalorder %s4676_s17, %s4178_s4  ;;  %p4185_p12 = scmp.lt.u32.totalorder %s4183_s20, %s4178_s4 }
  0xec   : > { %p4187_p0 = scmp.lt.u32.totalorder %s4178_s4, %s4676_s17 }
  0xed   : > { %p4181_p1 = pnand %p4180_p8, %p4179_p10  ;;  %p4186_p13 = por %p4185_p12, %p4184_p11 }
  0xef   : > { %p4182_p3 = pneg %p4181_p1  ;;  %p4188_p2 = por %p4187_p0, %p4186_p13 }
  0xf1   : > { %p4189_p5 = pnand %p4188_p2, %p4182_p3 }
  0xf3   : > { %4192 = shalt.err (!%p4189_p5)
}
  0xf4   : > { %s4193_s25 = scalar_lea.vmem %s4678_s8, 128  ;;  %s4306_s0 = smov [#allocation2]  }
  0xf5   : > { %p4194_p10 = scmp.ne.s32.totalorder %s4678_s8, %s4193_s25  ;;  %s4198_s16 = sshll.u32 %s4306_s0, 4  ;;  %s4199_s16 = int_to_ptr.vmem [resolvable:$false] %s4198_s16 }
  0xf6   : > { %s4200_s19 = scalar_lea.vmem %s4199_s16, 256  ;;  %p4201_p7 = scmp.lt.s32.totalorder %s4678_s8, %s4199_s16 }
  0xf7   : > { %p4196_p1 = pnand %p4194_p10, %p4180_p8  ;;  %p4202_p11 = scmp.lt.s32.totalorder %s4200_s19, %s4193_s25 }
  0xf9   : > { %p4197_p9 = pneg %p4196_p1  ;;  %p4203_p12 = por %p4202_p11, %p4201_p7 }
  0xfb   : > { %p4204_p13 = pnand %p4203_p12, %p4197_p9 }
  0xfd   : > { %4207 = shalt.err (!%p4204_p13)
}
  0xfe   : > { %3671 = dma.hbm_to_vmem [thread:$0]  (!%p4682_p4), %s4676_s17, 128, %s4678_s8, %s547_s3  }
  0xff   : > { %p5187_p3 = scmp.ne.s32.totalorder %s5171_s28, 0 }
 0x100   : > { %s4714_s4 = sand.u32 (!%p5187_p3), 1, %s4282_s22  }
 0x101   : > { %579 = sbr.rel (%p5187_p3) target bundleno = 6362 (0x18da), region = 84  ;;  %s3269_s20 = sshll.u32 (!%p5187_p3), %s4714_s4, 3 }
 0x102   : > { %s582_s14 = scalar_lea.sflag (!%p5187_p3), [#allocation3], %s4714_s4  ;;  %s585_s10 = scalar_lea.vmem (!%p5187_p3), [#allocation2], %s3269_s20 }
 0x108   : > { %4253 = dma.done.wait (%p4657_p6), %s582_s14, 128  }
 0x109   : > { %4255 = vsyncadd (%p4657_p6), %s582_s14, 4294967168  ;;  %p5188_p7 = scmp.eq.s32.totalorder %s4422_s27, 0 }
 0x10b   : > { %4257 = dma.done.wait (%p5188_p7), [#allocation6], 544   ;;  %p5189_p9 = pmov %p5188_p7 }
 0x10c   : > { %p5190_p4 = pmov %p5188_p7 }
 0x10d   : > { %4259 = vsyncadd (%p5189_p9), [#allocation6], 4294966752 }
 0x10e   : > { %4261 = dma.done.wait (%p5190_p4), [#allocation9], 1024   ;;  %p5191_p8 = pmov %p5190_p4 }
 0x10f   : > { %p5192_p0 = pmov %p5190_p4 }
 0x110   : > { %4263 = vsyncadd (%p5191_p8), [#allocation9], 4294966272 }
 0x111   : > { %4265 = dma.done.wait (%p5192_p0), [#allocation12], 96   ;;  %p5193_p2 = pmov %p5192_p0 }
 0x112   : > { %p5194_p6 = pmov %p5192_p0 }
 0x113   : > { %4267 = vsyncadd (%p5193_p2), [#allocation12], 4294967200 }
 0x114   : > { %4269 = dma.done.wait (%p5194_p6), [#allocation15], 8224   ;;  %p5195_p5 = pmov %p5192_p0 }
 0x115   : > { %v4307_v0 = vmov 0.0   ;;  %vm4308_vm0 = vmmov 0   ;;  %v3750_v1 = vld [vmem:[#allocation5] sm:$0xff]   ;;  %v3751_v2 = vld [vmem:[#allocation5 + $0x8] sm:$0xff]   ;;  %v4744_v3 = vld [vmem:[%s585_s10] sm:$0xff]  ;;  %vm726_vm1 = vcmask 261120   ;;  %v929_v14 = vlaneseq }
 0x116   : > { %4271 = vsyncadd (%p5195_p5), [#allocation15], 4294959072  ;;  %3491 = vmatprep.subr.bf16.mxu1 %v4307_v0  ;;  %3495 = vmatprep.mubr.msk.bf16.mxu1 %vm4308_vm0, %v4307_v0  ;;  %v707_v4 = vpack.c.bf16 %v4744_v3, %v4744_v3  ;;  %v3279_v5 = vld [vmem:[#allocation7] ss:$0 sm:$0xff]  ;;  %s4309_s3 = smov 112   ;;  %s4310_s28 = smov 96  }
 0x117   : > { %3514 = vmatprep.subr.mxu0 %v4307_v0  ;;  %3516 = vmatprep.mubr.msk.f32.mxu0 %vm4308_vm0, %v4307_v0  ;;  %vm775_vm2 = vcmask 130048   ;;  %p672_p10 = scmp.lt.s32.totalorder %s4422_s27, 1  ;;  %s5196_s1 = sld [smem:[#allocation25_spill]]  ;;  %v4774_v17 = vshrl.u32 %v929_v14, 7  ;;  %vm936_vm3 = vcmask 64512   ;;  %v3752_v49 = vld [vmem:[#allocation8] sm:$0xff]  }
 0x118   : > { %3492 = vmatpush3.bf16.msra.mxu1 %v3750_v1  ;;  %s4311_s25 = smov 64   ;;  %v3753_v50 = vld [vmem:[#allocation8 + $0x8] sm:$0xff]   ;;  %s5158_s0 = smov 16   ;;  %vm1319_vm5 = vcmask 523264  }
 0x119   : > { %3493 = vmatprep.subr.bf16.mxu1 %v4307_v0  ;;  %s4768_s15 = scalar_select %p672_p10, %s4422_s27, 1  ;;  %v4777_v19 = vsub.s32 0, %v4774_v17  ;;  %v4818_v14 = vsub.s32 1, %v4774_v17 }
 0x11a   : > { %s5197_s20 = sld [smem:[#allocation30_spill]]  ;;  %s5198_s17 = sld [smem:[#allocation29_spill]] }
 0x11b   : > { %s5200_s10 = sld [smem:[#allocation26_spill]]  ;;  %s5201_s16 = sld [smem:[#allocation31_spill]] }
 0x11c   : > { %3494 = vmatpush3.bf16.msra.mxu1 %v3751_v2  ;;  %s3422_s19 = sshll.u32 %s4422_s27, 4  ;;  %s671_s14 = scalar_lea.vmem [#allocation17], %s4714_s4 }
 0x11d   : > { %3499 = vmatprep.subr.mxu1 %v4307_v0  ;;  %s674_s30 = scalar_lea.vmem %s5196_s1, %s4768_s15  ;;  %p5205_p11 = scmp.ne.s32.totalorder %s5183_s26, 0 }
 0x11e   : > { %v681_v15 = vld [vmem:[%s674_s30] sm:$0x1]  ;;  %s5203_s30 = sld [smem:[#allocation33_spill]]  ;;  %s4315_s27 = smov [#allocation17]  }
 0x11f   : > { %3496 = vmatmul.mubr.msk.bf16.vlgmr.msra.gmra.mrb[0].mxu1 %vm726_vm1, %v707_v4  ;;  %v682_v16 = vsub.f32 1.0, %v681_v15  ;;  %v4821_v15 = vsub.s32 2, %v4774_v17 }
 0x120   : > { %3501 = vmatprep.mubr.msk.f32.mxu1 %vm4308_vm0, %v4307_v0  ;;  %v4808_v58 = vld [vmem:[%s5197_s20] sm:$0x3f] }
 0x121   : > { %v683_v18 = vmul.f32 -1e+09, %v682_v16  ;;  %v1120_v59 = vrot.slane %v4808_v58, %v4777_v19  ;;  %v1194_v16 = vrot.slane %v4808_v58, %v4818_v14 }
 0x123   : > { %v4780_v20 = vrot.slane %v683_v18, %v4777_v19 }
 0x1f2   : > { %v764_v6 = vpop.f32.mrb[0].mxu1 }
 0x1f3   : > { %v765_v7 = vadd.f32 %v3279_v5, %v764_v6  ;;  %v3497_v8 = vpop.f32.mrb[1].mxu1 }
 0x1f4   : > { %v767_v9 = vpop.f32.mrb[2].mxu1 }
 0x1f5   : > { %771 = vrot.lane.b32.xlu0 %v765_v7, %s4309_s3  ;;  %v3498_v10 = vpop.f32.mrb[3].mxu1 }
 0x1f6   : > { %v3754_v10 = vld [vmem:[#allocation10] sm:$0xff]  }
 0x1f9   : > { %773 = vrot.lane.b32.xlu0 %v765_v7, %s4310_s28 }
 0x267   : > { %v772_v11 = vpop.permute.xlu0 %771 }
 0x268   : > { %850 = vrot.lane.b32.xlu1 %v772_v11, %s4310_s28 }
 0x26b   : > { %v774_v12 = vpop.permute.xlu0 %773 }
 0x26c   : > { %3500 = vmatpush3.xpose.msk.msra.mxu1 %vm775_vm2, %v774_v12 }
 0x26d   : > { %3504 = vmatprep.subr.mxu1 %v4307_v0 }
 0x26f   : > { %3502 = vmatmul.mubr.msk.f32.vlgmr.msra.gmra.mrb[4].mxu1 %vm775_vm2, %v765_v7 }
 0x270   : > { %3506 = vmatprep.mubr.msk.f32.mxu1 %vm4308_vm0, %v4307_v0 }
 0x2da   : > { %v851_v13 = vpop.permute.xlu1 %850 }
 0x2db   : > { %3505 = vmatpush3.xpose.msk.msra.mxu1 %vm775_vm2, %v851_v13 }
 0x2dc   : > { %3509 = vmatprep.subr.mxu1 %v4307_v0 }
 0x2de   : > { %3507 = vmatmul.mubr.msk.f32.vlgmr.msra.gmra.mrb[6].mxu1 %vm775_vm2, %v772_v11 }
 0x2df   : > { %3511 = vmatprep.mubr.msk.f32.mxu1 %vm4308_vm0, %v4307_v0 }
 0x342   : > { %v846_v21 = vpop.f32.mrb[4].mxu1 }
 0x343   : > { %v926_v22 = vmul.f32 0.25, %v846_v21  ;;  %v3503_v23 = vpop.f32.mrb[5].mxu1 }
 0x345   : > { %v934_v24 = vadd.f32 %v4780_v20, %v926_v22  ;;  %v1199_v22 = vrot.slane %v4808_v58, %v4821_v15 }
 0x347   : > { %v937_v25 = vsel %vm936_vm3, %v934_v24, -inf }
 0x348   : > { %938 = vmax.xlane.f32.xlu0 %v937_v25 }
 0x3b1   : > { %v922_v26 = vpop.f32.mrb[6].mxu1 }
 0x3b2   : > { %v927_v27 = vmul.f32 0.25, %v922_v26  ;;  %v3508_v28 = vpop.f32.mrb[7].mxu1  ;;  %v3756_v26 = vld [vmem:[%s5198_s17] sm:$0xff]  }
 0x3b3   : > { %v3758_v28 = vld [vmem:[%s5198_s17 + $0x10] sm:$0xff]  }
 0x3b4   : > { %v935_v29 = vadd.f32 %v4780_v20, %v927_v27  ;;  %v3757_v27 = vld [vmem:[%s5198_s17 + $0x8] sm:$0xff]  }
 0x3b6   : > { %v940_v30 = vsel %vm936_vm3, %v935_v29, -inf }
 0x3b7   : > { %941 = vmax.xlane.f32.xlu1 %v940_v30  ;;  %v3292_v30 = vld [vmem:[#allocation11] ss:$0 sm:$0xff] }
 0x3c8   : > { %1035 = vrot.lane.b32.xlu1 %v772_v11, %s4311_s25  ;;  %v3755_v11 = vld [vmem:[#allocation10 + $0x8] sm:$0xff]  }
 0x3d5   : > { %v939_v31 = vpop.xlane.xlu0 %938 }
 0x3d6   : > { %v943_v32 = vsub.f32 %v934_v24, %v939_v31 }
 0x3d8   : > { %v945_v35 = vmul.f32 1.442695, %v943_v32 }
 0x444   : > { %v942_v33 = vpop.xlane.xlu1 %941 }
 0x445   : > { %v944_v34 = vsub.f32 %v935_v29, %v942_v33  ;;  %v3759_v29 = vld [vmem:[%s5198_s17 + $0x18] sm:$0xff]  }
 0x447   : > { %v947_v36 = vmul.f32 1.442695, %v944_v34 }
 0x448   : > { %v1036_v37 = vpop.permute.xlu1 %1035 }
 0x449   : > { %3894 = vpow2.f32 %v947_v36  ;;  %3515 = vmatpush3.msra.mxu0 %v1036_v37 }
 0x44a   : > { %3527 = vmatprep.subr.bf16.mxu0 %v4307_v0  ;;  %3896 = vpow2.f32 %v945_v35 }
 0x453   : > { %v3895_v38 = vpop.eup %3894 }
 0x454   : > { %v952_v39 = vsel %vm936_vm3, %v3895_v38, 0.0  ;;  %v3897_v40 = vpop.eup %3896 }
 0x455   : > { %953 = vadd.xlane.f32.xlu0 %v952_v39  ;;  %v949_v41 = vsel %vm936_vm3, %v3897_v40, 0.0 }
 0x459   : > { %950 = vadd.xlane.f32.xlu0 %v949_v41 }
 0x46f   : > { %959 = vrot.lane.b32.xlu0 %v765_v7, %s4311_s25 }
 0x4e2   : > { %v954_v42 = vpop.xlane.xlu0 %953 }
 0x4e3   : > { %3898 = vrcp.f32 %v954_v42 }
 0x4e6   : > { %v951_v43 = vpop.xlane.xlu0 %950 }
 0x4e7   : > { %3900 = vrcp.f32 %v951_v43 }
 0x4ea   : > { %v960_v44 = vpop.permute.xlu0 %959 }
 0x4eb   : > { %3510 = vmatpush3.msra.mxu1 %v960_v44 }
 0x4ec   : > { %3519 = vmatprep.subr.bf16.mxu1 %v4307_v0 }
 0x4ed   : > { %v3899_v45 = vpop.eup %3898 }
 0x4ee   : > { %v958_v46 = vmul.f32 %v3899_v45, %v3895_v38 }
 0x4f0   : > { %3517 = vmatmul.mubr.msk.f32.vlgmr.msra.gmra.mrb[0].mxu0 %vm936_vm3, %v958_v46 }
 0x4f1   : > { %v3901_v47 = vpop.eup %3900  ;;  %3531 = vmatprep.mubr.msk.bf16.mxu0 %vm4308_vm0, %v4307_v0  ;;  %3528 = vmatpush3.bf16.msra.mxu0 %v3754_v10 }
 0x4f2   : > { %v957_v48 = vmul.f32 %v3901_v47, %v3897_v40  ;;  %3529 = vmatprep.subr.bf16.mxu0 %v4307_v0 }
 0x4f4   : > { %3512 = vmatmul.mubr.msk.f32.vlgmr.msra.gmra.mrb[8].mxu1 %vm936_vm3, %v957_v48 }
 0x4f5   : > { %3523 = vmatprep.mubr.msk.bf16.mxu1 %vm4308_vm0, %v4307_v0  ;;  %3520 = vmatpush3.bf16.msra.mxu1 %v3752_v49 }
 0x4f6   : > { %3521 = vmatprep.subr.bf16.mxu1 %v4307_v0  ;;  %3530 = vmatpush3.bf16.msra.mxu0 %v3755_v11 }
 0x4f7   : > { %3547 = vmatprep.subr.bf16.mxu0 %v4307_v0 }
 0x4f9   : > { %3522 = vmatpush3.bf16.msra.mxu1 %v3753_v50 }
 0x4fa   : > { %3535 = vmatprep.subr.bf16.mxu1 %v4307_v0 }
 0x5c3   : > { %v1107_v51 = vpop.f32.mrb[0].mxu0 }
 0x5c4   : > { %1112 = vrot.lane.b32.xlu1 %v1107_v51, %s5158_s0  ;;  %v3518_v52 = vpop.f32.mrb[1].mxu0 }
 0x5c7   : > { %v1031_v53 = vpop.f32.mrb[8].mxu1 }
 0x5c8   : > { %v3513_v54 = vpop.f32.mrb[9].mxu1 }
 0x636   : > { %v1113_v55 = vpop.permute.xlu1 %1112 }
 0x637   : > { %v1115_v56 = vsel %vm775_vm2, %v1031_v53, %v1113_v55 }
 0x638   : > { %v1116_v57 = vpack.c.bf16 %v1115_v56, %v1115_v56  ;;  %v4313_v56 = vmov -1.0  }
 0x63a   : > { %3524 = vmatmul.mubr.msk.bf16.vlgmr.msra.gmra.mrb[12].mxu1 %vm726_vm1, %v1116_v57 }
 0x63b   : > { %3543 = vmatprep.mubr.msk.bf16.mxu1 %vm4308_vm0, %v4307_v0  ;;  %3536 = vmatpush3.bf16.msra.mxu1 %v3756_v26  ;;  %v1384_v26 = vsub.s32 5, %v4774_v17 }
 0x63c   : > { %3537 = vmatprep.subr.bf16.mxu1 %v4307_v0 }
 0x63f   : > { %3538 = vmatpush3.bf16.msra.mxu1 %v3757_v27 }
 0x640   : > { %3539 = vmatprep.subr.bf16.mxu1 %v4307_v0 }
 0x643   : > { %3540 = vmatpush3.bf16.msra.mxu1 %v3758_v28 }
 0x644   : > { %3541 = vmatprep.subr.bf16.mxu1 %v4307_v0 }
 0x647   : > { %3542 = vmatpush3.bf16.msra.mxu1 %v3759_v29 }
 0x648   : > { %3555 = vmatprep.subr.mxu1 %v4307_v0 }
 0x70d   : > { %v1170_v60 = vpop.f32.mrb[12].mxu1 }
 0x70e   : > { %v1171_v61 = vadd.f32 %v1170_v60, %v1120_v59  ;;  %v3525_v62 = vpop.f32.mrb[13].mxu1 }
 0x70f   : > { %v1173_v63 = vpop.f32.mrb[14].mxu1 }
 0x710   : > { %v3526_v1 = vpop.f32.mrb[15].mxu1  ;;  %v1176_v2 = vadd.f32 %v1171_v61, %v4744_v3 }
 0x711   : > { %v4851_v1 = vsub.s32 3, %v4774_v17 }
 0x712   : > { %v1177_v4 = vsel %vm726_vm1, %v1176_v2, 0.0 }
 0x713   : > { %1178 = vadd.xlane.f32.xlu1 %v1177_v4 }
 0x7a0   : > { %v1179_v5 = vpop.xlane.xlu1 %1178 }
 0x7a1   : > { %v1181_v6 = vmul.f32 0.03125, %v1179_v5 }
 0x7a3   : > { %v1182_v7 = vsub.f32 %v1176_v2, %v1181_v6  ;;  %v1294_v2 = vrot.slane %v4808_v58, %v4851_v1 }
 0x7a5   : > { %v1183_v8 = vmul.f32 %v1182_v7, %v1182_v7 }
 0x7a7   : > { %v1184_v9 = vsel %vm726_vm1, %v1183_v8, 0.0 }
 0x7a8   : > { %1185 = vadd.xlane.f32.xlu0 %v1184_v9 }
 0x835   : > { %v1186_v12 = vpop.xlane.xlu0 %1185 }
 0x836   : > { %v1187_v3 = vmul.f32 0.03125, %v1186_v12 }
 0x838   : > { %v1188_v13 = vadd.f32 1e-12, %v1187_v3 }
 0x83a   : > { %3902 = vrsqrt.f32 %v1188_v13 }
 0x844   : > { %v3903_v18 = vpop.eup %3902 }
 0x845   : > { %v1190_v21 = vmul.f32 %v3903_v18, %v1182_v7  ;;  %v3760_v18 = vld [vmem:[#allocation5 + $0x10] sm:$0xff]  }
 0x847   : > { %v1195_v23 = vmul.f32 %v1194_v16, %v1190_v21  ;;  %v3761_v21 = vld [vmem:[#allocation5 + $0x18] sm:$0xff]  }
 0x849   : > { %v1200_v24 = vadd.f32 %v1199_v22, %v1195_v23 }
 0x84b   : > { %v1201_v25 = vpack.c.bf16 %v1200_v24, %v1200_v24 }
 0x84d   : > { %3532 = vmatmul.mubr.msk.bf16.vlgmr.msra.gmra.mrb[4].mxu0 %vm726_vm1, %v1201_v25  ;;  %v1379_v25 = vsub.s32 4, %v4774_v17 }
 0x84e   : > { %3551 = vmatprep.mubr.msk.bf16.mxu0 %vm4308_vm0, %v4307_v0  ;;  %3548 = vmatpush3.bf16.msra.mxu0 %v3760_v18 }
 0x84f   : > { %3549 = vmatprep.subr.bf16.mxu0 %v4307_v0  ;;  %v1380_v27 = vrot.slane %v4808_v58, %v1379_v25 }
 0x852   : > { %3550 = vmatpush3.bf16.msra.mxu0 %v3761_v21 }
 0x853   : > { %3560 = vmatprep.subr.mxu0 %v4307_v0 }
 0x920   : > { %v1257_v31 = vpop.f32.mrb[4].mxu0 }
 0x921   : > { %v1258_v32 = vadd.f32 %v3292_v30, %v1257_v31  ;;  %v3533_v33 = vpop.f32.mrb[5].mxu0  ;;  %v1385_v30 = vrot.slane %v4808_v58, %v1384_v26 }
 0x922   : > { %v1260_v34 = vpop.f32.mrb[6].mxu0 }
 0x923   : > { %v1264_v35 = vmul.f32 0.70710677, %v1258_v32  ;;  %v3534_v36 = vpop.f32.mrb[7].mxu0  ;;  %v1263_v60 = vmul.f32 0.5, %v1258_v32  ;;  %v3310_v34 = vld [vmem:[#allocation7 + $0x1] ss:$0 sm:$0xff] }
 0x925   : > { %v1267_v37 = vand.u32 2147483647, %v1264_v35  ;;  %vm1265_vm4 = vcmp.ge.f32.partialorder %v1264_v35, 0.0 }
 0x926   : > { %v1266_v57 = vsel %vm1265_vm4, 1.0, %v4313_v56 }
 0x927   : > { %v1268_v38 = vmul.f32 0.3275911, %v1267_v37  ;;  %v1281_v40 = vsub.f32 0.0, %v1267_v37 }
 0x929   : > { %v1269_v39 = vadd.f32 1.0, %v1268_v38  ;;  %v1282_v42 = vmul.f32 %v1281_v40, %v1267_v37 }
 0x92b   : > { %3904 = vrcp.f32 %v1269_v39  ;;  %v1283_v45 = vmul.f32 1.442695, %v1282_v42 }
 0x92d   : > { %3906 = vpow2.f32 %v1283_v45 }
 0x935   : > { %v3905_v41 = vpop.eup %3904 }
 0x936   : > { %v1272_v43 = vmul.f32 1.0614054, %v3905_v41 }
 0x937   : > { %v3907_v53 = vpop.eup %3906 }
 0x938   : > { %v1273_v44 = vadd.f32 -1.4531521, %v1272_v43 }
 0x93a   : > { %v1274_v46 = vmul.f32 %v3905_v41, %v1273_v44 }
 0x93c   : > { %v1275_v47 = vadd.f32 1.4214138, %v1274_v46 }
 0x93e   : > { %v1276_v48 = vmul.f32 %v3905_v41, %v1275_v47 }
 0x940   : > { %v1277_v49 = vadd.f32 -0.28449672, %v1276_v48 }
 0x942   : > { %v1278_v50 = vmul.f32 %v3905_v41, %v1277_v49 }
 0x944   : > { %v1279_v51 = vadd.f32 0.2548296, %v1278_v50 }
 0x946   : > { %v1280_v52 = vmul.f32 %v3905_v41, %v1279_v51 }
 0x948   : > { %v1285_v54 = vmul.f32 %v3907_v53, %v1280_v52 }
 0x94a   : > { %v1286_v55 = vsub.f32 1.0, %v1285_v54 }
 0x94c   : > { %v1287_v59 = vmul.f32 %v1286_v55, %v1266_v57 }
 0x94e   : > { %v1288_v61 = vadd.f32 1.0, %v1287_v59 }
 0x950   : > { %v1289_v62 = vmul.f32 %v1288_v61, %v1263_v60 }
 0x952   : > { %v1290_v63 = vpack.c.bf16 %v1289_v62, %v1289_v62 }
 0x954   : > { %3544 = vmatmul.mubr.msk.bf16.vlgmr.msra.gmra.mrb[16].mxu1 %vm1319_vm5, %v1290_v63 }
 0x955   : > { %3557 = vmatprep.mubr.msk.f32.mxu1 %vm4308_vm0, %v4307_v0 }
 0xa27   : > { %v1357_v4 = vpop.f32.mrb[16].mxu1 }
 0xa28   : > { %v1358_v5 = vadd.f32 %v1357_v4, %v1294_v2  ;;  %v3545_v6 = vpop.f32.mrb[17].mxu1 }
 0xa29   : > { %v1360_v7 = vpop.f32.mrb[18].mxu1 }
 0xa2a   : > { %v3546_v8 = vpop.f32.mrb[19].mxu1  ;;  %v1363_v9 = vadd.f32 %v1358_v5, %v1200_v24 }
 0xa2c   : > { %v1364_v10 = vsel %vm726_vm1, %v1363_v9, 0.0 }
 0xa2d   : > { %1365 = vadd.xlane.f32.xlu1 %v1364_v10  ;;  %v3762_v10 = vld [vmem:[#allocation8 + $0x10] sm:$0xff]  }
 0xaba   : > { %v1366_v11 = vpop.xlane.xlu1 %1365 }
 0xabb   : > { %v1367_v12 = vmul.f32 0.03125, %v1366_v11  ;;  %v3763_v11 = vld [vmem:[#allocation8 + $0x18] sm:$0xff]  }
 0xabd   : > { %v1368_v3 = vsub.f32 %v1363_v9, %v1367_v12 }
 0xabf   : > { %v1369_v13 = vmul.f32 %v1368_v3, %v1368_v3 }
 0xac1   : > { %v1370_v16 = vsel %vm726_vm1, %v1369_v13, 0.0 }
 0xac2   : > { %1371 = vadd.xlane.f32.xlu0 %v1370_v16 }
 0xb4f   : > { %v1372_v22 = vpop.xlane.xlu0 %1371 }
 0xb50   : > { %v1373_v23 = vmul.f32 0.03125, %v1372_v22 }
 0xb52   : > { %v1374_v24 = vadd.f32 1e-12, %v1373_v23  ;;  %v4913_v23 = vld [vmem:[%s5197_s20 + $0x8] sm:$0x3f] }
 0xb54   : > { %3908 = vrsqrt.f32 %v1374_v24  ;;  %v1821_v24 = vrot.slane %v4913_v23, %v4777_v19 }
 0xb5e   : > { %v3909_v28 = vpop.eup %3908 }
 0xb5f   : > { %v1376_v29 = vmul.f32 %v3909_v28, %v1368_v3 }
 0xb61   : > { %v1381_v31 = vmul.f32 %v1380_v27, %v1376_v29 }
 0xb63   : > { %v4867_v32 = vadd.f32 %v1385_v30, %v1381_v31 }
 0xb65   : > { %v1417_v33 = vpack.c.bf16 %v4867_v32, %v4867_v32 }
 0xb67   : > { %3552 = vmatmul.mubr.msk.bf16.vlgmr.msra.gmra.mrb[8].mxu0 %vm726_vm1, %v1417_v33 }
 0xb68   : > { %3562 = vmatprep.mubr.msk.f32.mxu0 %vm4308_vm0, %v4307_v0 }
 0xc3a   : > { %v1473_v35 = vpop.f32.mrb[8].mxu0 }
 0xc3b   : > { %v1474_v36 = vadd.f32 %v3310_v34, %v1473_v35  ;;  %v3553_v37 = vpop.f32.mrb[9].mxu0 }
 0xc3c   : > { %v1476_v38 = vpop.f32.mrb[10].mxu0 }
 0xc3d   : > { %1480 = vrot.lane.b32.xlu1 %v1474_v36, %s4309_s3  ;;  %v3554_v39 = vpop.f32.mrb[11].mxu0  ;;  %s5199_s3 = smov 16  }
 0xc41   : > { %1482 = vrot.lane.b32.xlu1 %v1474_v36, %s4310_s28 }
 0xcaf   : > { %v1481_v58 = vpop.permute.xlu1 %1480 }
 0xcb0   : > { %1558 = vrot.lane.b32.xlu0 %v1481_v58, %s4310_s28  ;;  %s3278_s28 = sshll.u32 %s4768_s15, 3 }
 0xcb1   : > { %s678_s8 = scalar_lea.vmem %s5200_s10, %s3278_s28  ;;  %s5202_s10 = sld [smem:[#allocation32_spill]] }
 0xcb3   : > { %v1483_v40 = vpop.permute.xlu1 %1482 }
 0xcb4   : > { %3556 = vmatpush3.xpose.msk.msra.mxu1 %vm775_vm2, %v1483_v40  ;;  %v3765_v40 = vld [vmem:[#allocation10 + $0x18] sm:$0xff]  }
 0xcb5   : > { %3565 = vmatprep.subr.mxu1 %v4307_v0 }
 0xcb7   : > { %3558 = vmatmul.mubr.msk.f32.vlgmr.msra.gmra.mrb[10].mxu1 %vm775_vm2, %v1474_v36 }
 0xcb8   : > { %3567 = vmatprep.mubr.msk.f32.mxu1 %vm4308_vm0, %v4307_v0 }
 0xd22   : > { %v1559_v41 = vpop.permute.xlu0 %1558 }
 0xd23   : > { %3561 = vmatpush3.xpose.msk.msra.mxu0 %vm775_vm2, %v1559_v41 }
 0xd24   : > { %3570 = vmatprep.subr.mxu0 %v4307_v0 }
 0xd26   : > { %3563 = vmatmul.mubr.msk.f32.vlgmr.msra.gmra.mrb[2].mxu0 %vm775_vm2, %v1481_v58 }
 0xd27   : > { %3572 = vmatprep.mubr.msk.f32.mxu0 %vm4308_vm0, %v4307_v0 }
 0xd8a   : > { %v1554_v42 = vpop.f32.mrb[10].mxu1 }
 0xd8b   : > { %v1634_v43 = vmul.f32 0.25, %v1554_v42  ;;  %v3559_v44 = vpop.f32.mrb[11].mxu1 }
 0xd8d   : > { %v1636_v45 = vadd.f32 %v1634_v43, %v4780_v20 }
 0xd8f   : > { %v1638_v46 = vsel %vm936_vm3, %v1636_v45, -inf }
 0xd90   : > { %1639 = vmax.xlane.f32.xlu0 %v1638_v46  ;;  %v1899_v46 = vrot.slane %v4913_v23, %v4821_v15 }
 0xdf9   : > { %v1630_v47 = vpop.f32.mrb[2].mxu0 }
 0xdfa   : > { %v1635_v48 = vmul.f32 0.25, %v1630_v47  ;;  %v3564_v49 = vpop.f32.mrb[3].mxu0 }
 0xdfc   : > { %v1637_v50 = vadd.f32 %v1635_v48, %v4780_v20 }
 0xdfe   : > { %v1641_v51 = vsel %vm936_vm3, %v1637_v50, -inf }
 0xdff   : > { %1642 = vmax.xlane.f32.xlu1 %v1641_v51  ;;  %v3767_v51 = vld [vmem:[%s5198_s17 + $0x28] sm:$0xff]  }
 0xe10   : > { %1736 = vrot.lane.b32.xlu1 %v1481_v58, %s4311_s25  ;;  %v3764_v58 = vld [vmem:[#allocation10 + $0x10] sm:$0xff]  }
 0xe1d   : > { %v1640_v52 = vpop.xlane.xlu0 %1639 }
 0xe1e   : > { %v1644_v53 = vsub.f32 %v1636_v45, %v1640_v52  ;;  %v3768_v52 = vld [vmem:[%s5198_s17 + $0x30] sm:$0xff]  }
 0xe20   : > { %v1646_v57 = vmul.f32 1.442695, %v1644_v53  ;;  %v3769_v53 = vld [vmem:[%s5198_s17 + $0x38] sm:$0xff]  }
 0xe8c   : > { %v1643_v54 = vpop.xlane.xlu1 %1642 }
 0xe8d   : > { %v1645_v55 = vsub.f32 %v1637_v50, %v1643_v54  ;;  %v3766_v50 = vld [vmem:[%s5198_s17 + $0x20] sm:$0xff]   ;;  %v3323_v54 = vld [vmem:[#allocation11 + $0x1] ss:$0 sm:$0xff] }
 0xe8f   : > { %v1648_v59 = vmul.f32 1.442695, %v1645_v55 }
 0xe90   : > { %v1737_v60 = vpop.permute.xlu1 %1736 }
 0xe91   : > { %3910 = vpow2.f32 %v1648_v59  ;;  %3571 = vmatpush3.msra.mxu0 %v1737_v60 }
 0xe92   : > { %3583 = vmatprep.subr.bf16.mxu0 %v4307_v0  ;;  %3912 = vpow2.f32 %v1646_v57 }
 0xe9b   : > { %v3911_v61 = vpop.eup %3910 }
 0xe9c   : > { %v1653_v20 = vsel %vm936_vm3, %v3911_v61, 0.0  ;;  %v3913_v62 = vpop.eup %3912 }
 0xe9d   : > { %1654 = vadd.xlane.f32.xlu0 %v1653_v20  ;;  %v1650_v63 = vsel %vm936_vm3, %v3913_v62, 0.0 }
 0xea1   : > { %1651 = vadd.xlane.f32.xlu0 %v1650_v63 }
 0xeb7   : > { %1660 = vrot.lane.b32.xlu0 %v1474_v36, %s4311_s25  ;;  %s5204_s25 = sld [smem:[#allocation34_spill]] }
 0xebd   : > { %s5084_s0 = scalar_lea.hbm %s5204_s25, %s3422_s19 }
 0xf2a   : > { %v1655_v2 = vpop.xlane.xlu0 %1654 }
 0xf2b   : > { %3914 = vrcp.f32 %v1655_v2 }
 0xf2e   : > { %v1652_v4 = vpop.xlane.xlu0 %1651 }
 0xf2f   : > { %3916 = vrcp.f32 %v1652_v4 }
 0xf32   : > { %v1661_v5 = vpop.permute.xlu0 %1660 }
 0xf33   : > { %3566 = vmatpush3.msra.mxu1 %v1661_v5 }
 0xf34   : > { %3575 = vmatprep.subr.bf16.mxu1 %v4307_v0 }
 0xf35   : > { %v3915_v6 = vpop.eup %3914 }
 0xf36   : > { %v1659_v7 = vmul.f32 %v3915_v6, %v3911_v61 }
 0xf38   : > { %3573 = vmatmul.mubr.msk.f32.vlgmr.msra.gmra.mrb[12].mxu0 %vm936_vm3, %v1659_v7 }
 0xf39   : > { %v3917_v8 = vpop.eup %3916  ;;  %3587 = vmatprep.mubr.msk.bf16.mxu0 %vm4308_vm0, %v4307_v0  ;;  %3584 = vmatpush3.bf16.msra.mxu0 %v3764_v58 }
 0xf3a   : > { %v1658_v9 = vmul.f32 %v3917_v8, %v3913_v62  ;;  %3585 = vmatprep.subr.bf16.mxu0 %v4307_v0 }
 0xf3c   : > { %3568 = vmatmul.mubr.msk.f32.vlgmr.msra.gmra.mrb[20].mxu1 %vm936_vm3, %v1658_v9 }
 0xf3d   : > { %3579 = vmatprep.mubr.msk.bf16.mxu1 %vm4308_vm0, %v4307_v0  ;;  %3576 = vmatpush3.bf16.msra.mxu1 %v3762_v10 }
 0xf3e   : > { %3577 = vmatprep.subr.bf16.mxu1 %v4307_v0  ;;  %3586 = vmatpush3.bf16.msra.mxu0 %v3765_v40  ;;  %v4314_v40 = vmov 0  }
 0xf3f   : > { %3748 = vset.pattern.permute.xlu1 %v4314_v40  ;;  %3749 = vset.pattern.permute.xlu0 %v4314_v40 }
 0xf41   : > { %3578 = vmatpush3.bf16.msra.mxu1 %v3763_v11 }
 0xf42   : > { %3591 = vmatprep.subr.bf16.mxu1 %v4307_v0 }
0x100b   : > { %v1808_v12 = vpop.f32.mrb[12].mxu0 }
0x100c   : > { %1813 = vrot.lane.b32.xlu1 %v1808_v12, %s5199_s3  ;;  %v3574_v3 = vpop.f32.mrb[13].mxu0  ;;  %s3092_s3 = sshll.u32 %s671_s14, 4  ;;  %s5086_s3 = int_to_ptr.vmem [resolvable:$true] %s3092_s3 }
0x100d   : > { %s4208_s15 = scalar_lea.vmem %s5086_s3, 16 }
0x100e   : > { %p4209_p1 = scmp.ne.s32.totalorder %s5086_s3, %s4208_s15 }
0x100f   : > { %v1732_v13 = vpop.f32.mrb[20].mxu1 }
0x1010   : > { %v3569_v16 = vpop.f32.mrb[21].mxu1  ;;  %p4210_p12 = pnand %p4209_p1, %p5205_p11 }
0x1012   : > { %p4211_p13 = pneg %p4210_p12 }
0x107e   : > { %v1814_v18 = vpop.permute.xlu1 %1813 }
0x107f   : > { %v1816_v21 = vsel %vm775_vm2, %v1732_v13, %v1814_v18 }
0x1080   : > { %v1817_v22 = vpack.c.bf16 %v1816_v21, %v1816_v21 }
0x1082   : > { %3580 = vmatmul.mubr.msk.bf16.vlgmr.msra.gmra.mrb[24].mxu1 %vm726_vm1, %v1817_v22 }
0x1083   : > { %3599 = vmatprep.mubr.msk.bf16.mxu1 %vm4308_vm0, %v4307_v0  ;;  %3592 = vmatpush3.bf16.msra.mxu1 %v3766_v50  ;;  %v3773_v50 = vld [vmem:[%s5201_s16 + $0x20] ss:$16 sps:$4 sm:$0xff]  }
0x1084   : > { %3593 = vmatprep.subr.bf16.mxu1 %v4307_v0 }
0x1087   : > { %3594 = vmatpush3.bf16.msra.mxu1 %v3767_v51  ;;  %v3778_v51 = vld [vmem:[%s5201_s16 + $0xc] ss:$16 sps:$4 sm:$0xff]  }
0x1088   : > { %3595 = vmatprep.subr.bf16.mxu1 %v4307_v0 }
0x108b   : > { %3596 = vmatpush3.bf16.msra.mxu1 %v3768_v52  ;;  %v3791_v52 = vld [vmem:[#allocation14 + $0x100] ss:$8 sps:$4 sm:$0xff]  }
0x108c   : > { %3597 = vmatprep.subr.bf16.mxu1 %v4307_v0 }
0x108f   : > { %3598 = vmatpush3.bf16.msra.mxu1 %v3769_v53  ;;  %v3793_v53 = vld [vmem:[#allocation14 + $0x104] ss:$8 sps:$4 sm:$0xff]  }
0x1090   : > { %2806 = vmatprep.subr.bf16.mxu1 %v3793_v53  ;;  %v3836_v53 = vld [vmem:[#allocation14 + $0xa0] ss:$8 sps:$4 sm:$0xff]  }
0x1155   : > { %v1871_v27 = vpop.f32.mrb[24].mxu1 }
0x1156   : > { %v1872_v28 = vadd.f32 %v1871_v27, %v1821_v24  ;;  %v3581_v29 = vpop.f32.mrb[25].mxu1 }
0x1157   : > { %v1874_v30 = vpop.f32.mrb[26].mxu1 }
0x1158   : > { %v3582_v31 = vpop.f32.mrb[27].mxu1  ;;  %v1877_v33 = vadd.f32 %v1872_v28, %v4867_v32  ;;  %v1894_v32 = vrot.slane %v4913_v23, %v4818_v14 }
0x115a   : > { %v1878_v34 = vsel %vm726_vm1, %v1877_v33, 0.0 }
0x115b   : > { %1879 = vadd.xlane.f32.xlu1 %v1878_v34 }
0x11e8   : > { %v1880_v35 = vpop.xlane.xlu1 %1879 }
0x11e9   : > { %v1881_v36 = vmul.f32 0.03125, %v1880_v35 }
0x11eb   : > { %v1882_v37 = vsub.f32 %v1877_v33, %v1881_v36  ;;  %v1994_v33 = vrot.slane %v4913_v23, %v4851_v1 }
0x11ed   : > { %v1883_v38 = vmul.f32 %v1882_v37, %v1882_v37 }
0x11ef   : > { %v1884_v39 = vsel %vm726_vm1, %v1883_v38, 0.0 }
0x11f0   : > { %1885 = vadd.xlane.f32.xlu0 %v1884_v39 }
0x127d   : > { %v1886_v41 = vpop.xlane.xlu0 %1885 }
0x127e   : > { %v1887_v42 = vmul.f32 0.03125, %v1886_v41  ;;  %v2086_v41 = vld [vmem:[%s678_s8] sm:$0xff]  ;;  %s3080_s8 = scalar_lea.sflag [#allocation4], %s4714_s4 }
0x127f   : > { %vm2087_vm7 = vcmp.gt.f32.partialorder %v2086_v41, 0.0  ;;  %v3823_v41 = vld [vmem:[#allocation14 + $0x154] ss:$8 sps:$4 sm:$0xff]  }
0x1280   : > { %v1888_v43 = vadd.f32 1e-12, %v1887_v42  ;;  %v2088_v42 = vsel %vm2087_vm7, 1, %v4314_v40 }
0x1282   : > { %3918 = vrsqrt.f32 %v1888_v43 }
0x128c   : > { %v3919_v44 = vpop.eup %3918 }
0x128d   : > { %v1890_v45 = vmul.f32 %v3919_v44, %v1882_v37 }
0x128f   : > { %v1895_v47 = vmul.f32 %v1894_v32, %v1890_v45 }
0x1291   : > { %v1900_v48 = vadd.f32 %v1899_v46, %v1895_v47  ;;  %v3772_v47 = vld [vmem:[%s5201_s16 + $0x4] ss:$16 sps:$4 sm:$0xff]  }
0x1292   : > { %2175 = vmatprep.subr.bf16.mxu0 %v3772_v47  ;;  %v3832_v47 = vld [vmem:[#allocation14 + $0x94] ss:$8 sps:$4 sm:$0xff]  }
0x1293   : > { %v1901_v49 = vpack.c.bf16 %v1900_v48, %v1900_v48 }
0x1295   : > { %3588 = vmatmul.mubr.msk.bf16.vlgmr.msra.gmra.mrb[16].mxu0 %vm726_vm1, %v1901_v49  ;;  %v3775_v49 = vld [vmem:[%s5201_s16 + $0x24] ss:$16 sps:$4 sm:$0xff]  }
0x1296   : > { %2207 = vmatprep.mubr.bf16.mxu0 %v4314_v40 }
0x1368   : > { %v1957_v55 = vpop.f32.mrb[16].mxu0 }
0x1369   : > { %v1958_v57 = vadd.f32 %v3323_v54, %v1957_v55  ;;  %v3589_v59 = vpop.f32.mrb[17].mxu0 }
0x136a   : > { %v1960_v60 = vpop.f32.mrb[18].mxu0  ;;  %v2079_v59 = vrot.slane %v4913_v23, %v1379_v25  ;;  %v3776_v25 = vld [vmem:[%s5201_s16 + $0x8] ss:$16 sps:$4 sm:$0xff]  }
0x136b   : > { %v1964_v61 = vmul.f32 0.70710677, %v1958_v57  ;;  %v3590_v20 = vpop.f32.mrb[19].mxu0  ;;  %v1963_v28 = vmul.f32 0.5, %v1958_v57 }
0x136c   : > { %v2084_v20 = vrot.slane %v4913_v23, %v1384_v26  ;;  %v3781_v26 = vld [vmem:[%s5201_s16 + $0x2c] ss:$16 sps:$4 sm:$0xff]   ;;  %v3779_v23 = vld [vmem:[%s5201_s16 + $0x28] ss:$16 sps:$4 sm:$0xff]  }
0x136d   : > { %v1967_v62 = vand.u32 2147483647, %v1964_v61  ;;  %vm1965_vm6 = vcmp.ge.f32.partialorder %v1964_v61, 0.0 }
0x136e   : > { %v1966_v24 = vsel %vm1965_vm6, 1.0, %v4313_v56 }
0x136f   : > { %v1968_v63 = vmul.f32 0.3275911, %v1967_v62  ;;  %v1981_v4 = vsub.f32 0.0, %v1967_v62 }
0x1371   : > { %v1969_v2 = vadd.f32 1.0, %v1968_v63  ;;  %v1982_v6 = vmul.f32 %v1981_v4, %v1967_v62 }
0x1373   : > { %3920 = vrcp.f32 %v1969_v2  ;;  %v1983_v8 = vmul.f32 1.442695, %v1982_v6 }
0x1375   : > { %3922 = vpow2.f32 %v1983_v8 }
0x137d   : > { %v3921_v5 = vpop.eup %3920 }
0x137e   : > { %v1972_v0 = vmul.f32 1.0614054, %v3921_v5 }
0x137f   : > { %v3923_v18 = vpop.eup %3922 }
0x1380   : > { %v1973_v7 = vadd.f32 -1.4531521, %v1972_v0 }
0x1382   : > { %v1974_v9 = vmul.f32 %v3921_v5, %v1973_v7 }
0x1384   : > { %v1975_v10 = vadd.f32 1.4214138, %v1974_v9 }
0x1386   : > { %v1976_v11 = vmul.f32 %v3921_v5, %v1975_v10 }
0x1388   : > { %v1977_v12 = vadd.f32 -0.28449672, %v1976_v11  ;;  %v3784_v11 = vld [vmem:[#allocation14 + $0x4] ss:$8 sps:$4 sm:$0xff]  }
0x138a   : > { %v1978_v3 = vmul.f32 %v3921_v5, %v1977_v12  ;;  %v3782_v12 = vld [vmem:[#allocation14] ss:$8 sps:$4 sm:$0xff]  }
0x138c   : > { %v1979_v13 = vadd.f32 0.2548296, %v1978_v3  ;;  %v3787_v3 = vld [vmem:[#allocation14 + $0x14] ss:$8 sps:$4 sm:$0xff]  }
0x138e   : > { %v1980_v16 = vmul.f32 %v3921_v5, %v1979_v13  ;;  %v3785_v13 = vld [vmem:[#allocation14 + $0x10] ss:$8 sps:$4 sm:$0xff]  }
0x1390   : > { %v1985_v21 = vmul.f32 %v3923_v18, %v1980_v16  ;;  %v3790_v16 = vld [vmem:[#allocation14 + $0x24] ss:$8 sps:$4 sm:$0xff]   ;;  %v3788_v18 = vld [vmem:[#allocation14 + $0x20] ss:$8 sps:$4 sm:$0xff]  }
0x1392   : > { %v1986_v22 = vsub.f32 1.0, %v1985_v21  ;;  %v3796_v21 = vld [vmem:[#allocation14 + $0x34] ss:$8 sps:$4 sm:$0xff]  }
0x1394   : > { %v1987_v27 = vmul.f32 %v1986_v22, %v1966_v24  ;;  %v3799_v22 = vld [vmem:[#allocation14 + $0x114] ss:$8 sps:$4 sm:$0xff]   ;;  %v3794_v24 = vld [vmem:[#allocation14 + $0x30] ss:$8 sps:$4 sm:$0xff]  }
0x1396   : > { %v1988_v29 = vadd.f32 1.0, %v1987_v27  ;;  %v3797_v27 = vld [vmem:[#allocation14 + $0x110] ss:$8 sps:$4 sm:$0xff]  }
0x1398   : > { %v1989_v30 = vmul.f32 %v1988_v29, %v1963_v28  ;;  %v3802_v28 = vld [vmem:[#allocation14 + $0x44] ss:$8 sps:$4 sm:$0xff]  }
0x1399   : > { %v3805_v29 = vld [vmem:[#allocation14 + $0x124] ss:$8 sps:$4 sm:$0xff]  }
0x139a   : > { %v1990_v31 = vpack.c.bf16 %v1989_v30, %v1989_v30  ;;  %v3800_v30 = vld [vmem:[#allocation14 + $0x40] ss:$8 sps:$4 sm:$0xff]  }
0x139c   : > { %3600 = vmatmul.mubr.msk.bf16.vlgmr.msra.gmra.mrb[28].mxu1 %vm1319_vm5, %v1990_v31  ;;  %v3803_v31 = vld [vmem:[#allocation14 + $0x120] ss:$8 sps:$4 sm:$0xff]  }
0x139d   : > { %2807 = vmatpush1.bf16.msra.mxu1 %v3791_v52  ;;  %v3841_v52 = vld [vmem:[#allocation14 + $0x184] ss:$8 sps:$4 sm:$0xff]  }
0x139e   : > { %2808 = vmatprep.subr.bf16.mxu1 %v3799_v22 }
0x13a1   : > { %2809 = vmatpush1.bf16.msra.mxu1 %v3797_v27 }
0x13a2   : > { %2810 = vmatprep.subr.bf16.mxu1 %v3805_v29 }
0x13a5   : > { %2811 = vmatpush1.bf16.msra.mxu1 %v3803_v31 }
0x146f   : > { %v2056_v34 = vpop.f32.mrb[28].mxu1 }
0x1470   : > { %v2057_v35 = vadd.f32 %v2056_v34, %v1994_v33  ;;  %v3601_v36 = vpop.f32.mrb[29].mxu1  ;;  %v3808_v33 = vld [vmem:[#allocation14 + $0x54] ss:$8 sps:$4 sm:$0xff]  }
0x1471   : > { %v2059_v37 = vpop.f32.mrb[30].mxu1  ;;  %v3811_v34 = vld [vmem:[#allocation14 + $0x134] ss:$8 sps:$4 sm:$0xff]   ;;  %v3809_v36 = vld [vmem:[#allocation14 + $0x130] ss:$8 sps:$4 sm:$0xff]  }
0x1472   : > { %v3602_v38 = vpop.f32.mrb[31].mxu1  ;;  %v2062_v39 = vadd.f32 %v2057_v35, %v1900_v48  ;;  %v3770_v48 = vld [vmem:[%s5201_s16] ss:$16 sps:$4 sm:$0xff]   ;;  %2812 = vmatprep.subr.bf16.mxu1 %v3811_v34  ;;  %v3814_v37 = vld [vmem:[#allocation14 + $0x64] ss:$8 sps:$4 sm:$0xff]  }
0x1473   : > { %2176 = vmatpush1.bf16.msra.mxu0 %v3770_v48  ;;  %v3806_v35 = vld [vmem:[#allocation14 + $0x50] ss:$8 sps:$4 sm:$0xff]   ;;  %2813 = vmatpush1.bf16.msra.mxu1 %v3809_v36  ;;  %v3817_v38 = vld [vmem:[#allocation14 + $0x144] ss:$8 sps:$4 sm:$0xff]   ;;  %v3835_v48 = vld [vmem:[#allocation14 + $0x174] ss:$8 sps:$4 sm:$0xff]  }
0x1474   : > { %v2063_v58 = vsel %vm726_vm1, %v2062_v39, 0.0  ;;  %2177 = vmatprep.subr.bf16.mxu0 %v3775_v49  ;;  %2814 = vmatprep.subr.bf16.mxu1 %v3817_v38  ;;  %v3830_v49 = vld [vmem:[#allocation14 + $0x90] ss:$8 sps:$4 sm:$0xff]  }
0x1475   : > { %2064 = vadd.xlane.f32.xlu1 %v2063_v58  ;;  %v3815_v58 = vld [vmem:[#allocation14 + $0x140] ss:$8 sps:$4 sm:$0xff]  }
0x1477   : > { %2178 = vmatpush1.bf16.msra.mxu0 %v3773_v50  ;;  %2815 = vmatpush1.bf16.msra.mxu1 %v3815_v58  ;;  %v3833_v50 = vld [vmem:[#allocation14 + $0x170] ss:$8 sps:$4 sm:$0xff]  }
0x1478   : > { %2216 = vmatprep.subr.bf16.mxu0 %v3778_v51  ;;  %2816 = vmatprep.subr.bf16.mxu1 %v3823_v41  ;;  %v3838_v51 = vld [vmem:[#allocation14 + $0xa4] ss:$8 sps:$4 sm:$0xff]  }
0x1486   : > { %2090 = vperm.xlu1 %3748, %v2088_v42   ;;  %v3818_v42 = vld [vmem:[#allocation14 + $0x70] ss:$8 sps:$4 sm:$0xff]  }
0x1502   : > { %v2065_v43 = vpop.xlane.xlu1 %2064 }
0x1503   : > { %v2066_v32 = vmul.f32 0.03125, %v2065_v43  ;;  %v3821_v43 = vld [vmem:[#allocation14 + $0x150] ss:$8 sps:$4 sm:$0xff]  }
0x1504   : > { %2817 = vmatpush1.bf16.msra.mxu1 %v3821_v43 }
0x1505   : > { %v2067_v44 = vsub.f32 %v2062_v39, %v2066_v32  ;;  %v3812_v39 = vld [vmem:[#allocation14 + $0x60] ss:$8 sps:$4 sm:$0xff]   ;;  %v3826_v32 = vld [vmem:[#allocation14 + $0x84] ss:$8 sps:$4 sm:$0xff]  }
0x1506   : > { %v2091_v62 = vpop.permute.xlu1 %2090 }
0x1507   : > { %v2068_v45 = vmul.f32 %v2067_v44, %v2067_v44  ;;  %vm2092_vm8 = vcmp.eq.s32.totalorder %v2091_v62, 1  ;;  %v3848_v62 = vld [vmem:[#allocation14 + $0xc0] ss:$8 sps:$4 sm:$0xff]  }
0x1509   : > { %v2069_v46 = vsel %vm726_vm1, %v2068_v45, 0.0  ;;  %v3824_v45 = vld [vmem:[#allocation14 + $0x80] ss:$8 sps:$4 sm:$0xff]  }
0x150a   : > { %2070 = vadd.xlane.f32.xlu0 %v2069_v46  ;;  %v3827_v46 = vld [vmem:[#allocation14 + $0x160] ss:$8 sps:$4 sm:$0xff]  }
0x1597   : > { %v2071_v54 = vpop.xlane.xlu0 %2070 }
0x1598   : > { %v2072_v55 = vmul.f32 0.03125, %v2071_v54  ;;  %v3839_v54 = vld [vmem:[#allocation14 + $0x180] ss:$8 sps:$4 sm:$0xff]  }
0x159a   : > { %v2073_v57 = vadd.f32 1e-12, %v2072_v55  ;;  %v3844_v55 = vld [vmem:[#allocation14 + $0xb4] ss:$8 sps:$4 sm:$0xff]  }
0x159c   : > { %3924 = vrsqrt.f32 %v2073_v57  ;;  %v3847_v57 = vld [vmem:[#allocation14 + $0x194] ss:$8 sps:$4 sm:$0xff]  }
0x15a6   : > { %v3925_v60 = vpop.eup %3924 }
0x15a7   : > { %v2075_v61 = vmul.f32 %v3925_v60, %v2067_v44  ;;  %v3829_v44 = vld [vmem:[#allocation14 + $0x164] ss:$8 sps:$4 sm:$0xff]   ;;  %v3845_v60 = vld [vmem:[#allocation14 + $0x190] ss:$8 sps:$4 sm:$0xff]  }
0x15a8   : > { %2818 = vmatprep.subr.bf16.mxu1 %v3829_v44 }
0x15a9   : > { %v2080_v63 = vmul.f32 %v2079_v59, %v2075_v61  ;;  %2819 = vmatpush1.bf16.msra.mxu1 %v3827_v46  ;;  %v3842_v59 = vld [vmem:[#allocation14 + $0xb0] ss:$8 sps:$4 sm:$0xff]   ;;  %v3850_v61 = vld [vmem:[#allocation14 + $0xc4] ss:$8 sps:$4 sm:$0xff]  }
0x15aa   : > { %2820 = vmatprep.subr.bf16.mxu1 %v3835_v48 }
0x15ab   : > { %v2085_v2 = vadd.f32 %v2084_v20, %v2080_v63  ;;  %v3853_v20 = vld [vmem:[#allocation14 + $0x1a4] ss:$8 sps:$4 sm:$0xff]   ;;  %v3851_v63 = vld [vmem:[#allocation14 + $0x1a0] ss:$8 sps:$4 sm:$0xff]  }
0x15ad   : > { %v2093_v4 = vsel %vm2092_vm8, %v2085_v2, -1e+30  ;;  %2821 = vmatpush1.bf16.msra.mxu1 %v3833_v50  ;;  %v3856_v2 = vld [vmem:[#allocation14 + $0xd4] ss:$8 sps:$4 sm:$0xff]  }
0x15ae   : > { %v2094_v5 = vsel %vm726_vm1, %v2093_v4, -inf  ;;  %2822 = vmatprep.subr.bf16.mxu1 %v3841_v52  ;;  %v3859_v4 = vld [vmem:[#allocation14 + $0x1b4] ss:$8 sps:$4 sm:$0xff]  }
0x15af   : > { %v2095_v6 = vrot.slane %v2094_v5, 4 }
0x15b1   : > { %v2096_v0 = vmax.f32 %v2094_v5, %v2095_v6  ;;  %2823 = vmatpush1.bf16.msra.mxu1 %v3839_v54  ;;  %v3854_v5 = vld [vmem:[#allocation14 + $0xd0] ss:$8 sps:$4 sm:$0xff]  }
0x15b2   : > { %2824 = vmatprep.subr.bf16.mxu1 %v3847_v57  ;;  %v3857_v6 = vld [vmem:[#allocation14 + $0x1b0] ss:$8 sps:$4 sm:$0xff]  }
0x15b3   : > { %v2097_v7 = vrot.slane %v2096_v0, 2 }
0x15b5   : > { %v2098_v8 = vmax.f32 %v2096_v0, %v2097_v7  ;;  %2825 = vmatpush1.bf16.msra.mxu1 %v3845_v60  ;;  %v3862_v0 = vld [vmem:[#allocation14 + $0xe4] ss:$8 sps:$4 sm:$0xff]  }
0x15b6   : > { %2826 = vmatprep.subr.bf16.mxu1 %v3853_v20  ;;  %v3865_v7 = vld [vmem:[#allocation14 + $0x1c4] ss:$8 sps:$4 sm:$0xff]  }
0x15b7   : > { %v2099_v9 = vrot.slane %v2098_v8, 1 }
0x15b9   : > { %v2100_v10 = vmax.f32 %v2098_v8, %v2099_v9  ;;  %2827 = vmatpush1.bf16.msra.mxu1 %v3851_v63  ;;  %v3860_v8 = vld [vmem:[#allocation14 + $0xe0] ss:$8 sps:$4 sm:$0xff]  }
0x15ba   : > { %2828 = vmatprep.subr.bf16.mxu1 %v3859_v4  ;;  %v3863_v9 = vld [vmem:[#allocation14 + $0x1c0] ss:$8 sps:$4 sm:$0xff]  }
0x15bb   : > { %v2101_v17 = vpack.c.bf16 %v2100_v10, %v2100_v10  ;;  %v3868_v10 = vld [vmem:[#allocation14 + $0xf4] ss:$8 sps:$4 sm:$0xff]  }
0x15bd   : > { %3340 = vmatmul.mubr.msk.bf16.vlgmr.msra.gmra.mrb[20].mxu0 %vm726_vm1, %v2101_v17  ;;  %2829 = vmatpush1.bf16.msra.mxu1 %v3857_v6 }
0x15be   : > { %2217 = vmatpush1.bf16.msra.mxu0 %v3776_v25  ;;  %2248 = vmatprep.mubr.bf16.mxu0 %v4314_v40  ;;  %v3820_v40 = vld [vmem:[#allocation14 + $0x74] ss:$8 sps:$4 sm:$0xff]  }
0x15bf   : > { %2218 = vmatprep.subr.bf16.mxu0 %v3781_v26  ;;  %2830 = vmatprep.subr.bf16.mxu1 %v3865_v7  ;;  %v3871_v25 = vld [vmem:[#allocation14 + $0x1d4] ss:$8 sps:$4 sm:$0xff]   ;;  %v3869_v26 = vld [vmem:[#allocation14 + $0x1d0] ss:$8 sps:$4 sm:$0xff]  }
0x15c1   : > { %2831 = vmatpush1.bf16.msra.mxu1 %v3863_v9 }
0x15c2   : > { %2219 = vmatpush1.bf16.msra.mxu0 %v3779_v23  ;;  %2832 = vmatprep.subr.bf16.mxu1 %v3871_v25  ;;  %v3874_v23 = vld [vmem:[#allocation14 + $0x1e4] ss:$8 sps:$4 sm:$0xff]  }
0x15c3   : > { %2765 = vmatprep.subr.bf16.mxu0 %v3784_v11  ;;  %v3872_v11 = vld [vmem:[#allocation14 + $0x1e0] ss:$8 sps:$4 sm:$0xff]  }
0x15c5   : > { %3341 = vmatmul.mubr.msk.bf16.vlgmr.msra.gmra.mrb[24].mxu0 %vm726_vm1, %v2101_v17  ;;  %v3866_v17 = vld [vmem:[#allocation14 + $0xf0] ss:$8 sps:$4 sm:$0xff]   ;;  %2833 = vmatpush1.bf16.msra.mxu1 %v3869_v26 }
0x15c6   : > { %2766 = vmatpush1.bf16.msra.mxu0 %v3782_v12  ;;  %2834 = vmatprep.subr.bf16.mxu1 %v3874_v23  ;;  %v3877_v12 = vld [vmem:[#allocation14 + $0x1f4] ss:$8 sps:$4 sm:$0xff]  }
0x15c7   : > { %2767 = vmatprep.subr.bf16.mxu0 %v3787_v3  ;;  %v3875_v3 = vld [vmem:[#allocation14 + $0x1f0] ss:$8 sps:$4 sm:$0xff]  }
0x15c9   : > { %2835 = vmatpush1.bf16.msra.mxu1 %v3872_v11 }
0x15ca   : > { %2768 = vmatpush1.bf16.msra.mxu0 %v3785_v13  ;;  %2836 = vmatprep.subr.bf16.mxu1 %v3877_v12  ;;  %v2110_v13 = vld [vmem:[#allocation13] sm:$0xf] }
0x15cb   : > { %2769 = vmatprep.subr.bf16.mxu0 %v3790_v16  ;;  %v2155_v16 = vrot.slane %v2110_v13, %v4777_v19  ;;  %v2163_v34 = vrot.slane %v2110_v13, %v4821_v15  ;;  %v2167_v36 = vrot.slane %v2110_v13, %v4851_v1 }
0x15cd   : > { %2837 = vmatpush1.bf16.msra.mxu1 %v3875_v3 }
0x15ce   : > { %2770 = vmatpush1.bf16.msra.mxu0 %v3788_v18  ;;  %v2159_v18 = vrot.slane %v2110_v13, %v4818_v14 }
0x15cf   : > { %2771 = vmatprep.subr.bf16.mxu0 %v3796_v21 }
0x15d2   : > { %2772 = vmatpush1.bf16.msra.mxu0 %v3794_v24 }
0x15d3   : > { %2773 = vmatprep.subr.bf16.mxu0 %v3802_v28 }
0x15d6   : > { %2774 = vmatpush1.bf16.msra.mxu0 %v3800_v30 }
0x15d7   : > { %2775 = vmatprep.subr.bf16.mxu0 %v3808_v33 }
0x15da   : > { %2776 = vmatpush1.bf16.msra.mxu0 %v3806_v35 }
0x15db   : > { %2777 = vmatprep.subr.bf16.mxu0 %v3814_v37 }
0x15de   : > { %2778 = vmatpush1.bf16.msra.mxu0 %v3812_v39 }
0x15df   : > { %2779 = vmatprep.subr.bf16.mxu0 %v3820_v40 }
0x15e2   : > { %2780 = vmatpush1.bf16.msra.mxu0 %v3818_v42 }
0x15e3   : > { %2781 = vmatprep.subr.bf16.mxu0 %v3826_v32 }
0x15e6   : > { %2782 = vmatpush1.bf16.msra.mxu0 %v3824_v45 }
0x15e7   : > { %2783 = vmatprep.subr.bf16.mxu0 %v3832_v47 }
0x15ea   : > { %2784 = vmatpush1.bf16.msra.mxu0 %v3830_v49 }
0x15eb   : > { %2785 = vmatprep.subr.bf16.mxu0 %v3838_v51 }
0x15ee   : > { %2786 = vmatpush1.bf16.msra.mxu0 %v3836_v53 }
0x15ef   : > { %2787 = vmatprep.subr.bf16.mxu0 %v3844_v55 }
0x15f2   : > { %2788 = vmatpush1.bf16.msra.mxu0 %v3842_v59 }
0x15f3   : > { %2789 = vmatprep.subr.bf16.mxu0 %v3850_v61 }
0x15f6   : > { %2790 = vmatpush1.bf16.msra.mxu0 %v3848_v62 }
0x15f7   : > { %2791 = vmatprep.subr.bf16.mxu0 %v3856_v2 }
0x15fa   : > { %2792 = vmatpush1.bf16.msra.mxu0 %v3854_v5 }
0x15fb   : > { %2793 = vmatprep.subr.bf16.mxu0 %v3862_v0 }
0x15fe   : > { %2794 = vmatpush1.bf16.msra.mxu0 %v3860_v8 }
0x15ff   : > { %2795 = vmatprep.subr.bf16.mxu0 %v3868_v10 }
0x1602   : > { %2796 = vmatpush1.bf16.msra.mxu0 %v3866_v17 }
0x1690   : > { %v2209_v21 = vpop.f32.mrb[20].mxu0 }
0x1691   : > { %v4986_v22 = vadd.f32 %v2209_v21, %v2155_v16  ;;  %v2211_v24 = vpop.f32.mrb[21].mxu0 }
0x1692   : > { %v4988_v27 = vadd.f32 %v2211_v24, %v2159_v18  ;;  %v2213_v28 = vpop.f32.mrb[22].mxu0 }
0x1693   : > { %v4991_v29 = vmul.f32 0.70710677, %v4986_v22  ;;  %v2214_v30 = vpop.f32.mrb[23].mxu0 }
0x1694   : > { %v4994_v31 = vmul.f32 0.70710677, %v4988_v27 }
0x1695   : > { %v2273_v33 = vand.u32 2147483647, %v4991_v29  ;;  %vm2265_vm9 = vcmp.ge.f32.partialorder %v4991_v29, 0.0  ;;  %v2257_v29 = vmul.f32 0.5, %v4986_v22 }
0x1696   : > { %v2274_v35 = vand.u32 2147483647, %v4994_v31  ;;  %vm2266_vm10 = vcmp.ge.f32.partialorder %v4994_v31, 0.0  ;;  %v2258_v31 = vmul.f32 0.5, %v4988_v27 }
0x1697   : > { %v2277_v37 = vmul.f32 0.3275911, %v2273_v33  ;;  %v2329_v49 = vsub.f32 0.0, %v2273_v33 }
0x1698   : > { %v2278_v38 = vmul.f32 0.3275911, %v2274_v35  ;;  %v2250_v39 = vpop.f32.mrb[24].mxu0  ;;  %v2330_v51 = vsub.f32 0.0, %v2274_v35 }
0x1699   : > { %v2281_v58 = vadd.f32 1.0, %v2277_v37  ;;  %v5000_v40 = vadd.f32 %v2250_v39, %v2163_v34  ;;  %v2252_v41 = vpop.f32.mrb[25].mxu0  ;;  %v2333_v54 = vmul.f32 %v2329_v49, %v2273_v33 }
0x169a   : > { %v2282_v42 = vadd.f32 1.0, %v2278_v38  ;;  %v5002_v43 = vadd.f32 %v2252_v41, %v2167_v36  ;;  %v2254_v32 = vpop.f32.mrb[26].mxu0  ;;  %v2334_v59 = vmul.f32 %v2330_v51, %v2274_v35 }
0x169b   : > { %3926 = vrcp.f32 %v2281_v58  ;;  %v5005_v44 = vmul.f32 0.70710677, %v5000_v40  ;;  %v2255_v15 = vpop.f32.mrb[27].mxu0  ;;  %v2337_v20 = vmul.f32 1.442695, %v2333_v54  ;;  %v2270_v54 = vsel %vm2266_vm10, 1.0, %v4313_v56 }
0x169c   : > { %3928 = vrcp.f32 %v2282_v42  ;;  %v5008_v45 = vmul.f32 0.70710677, %v5002_v43  ;;  %v2339_v4 = vmul.f32 1.442695, %v2334_v59 }
0x169d   : > { %v2275_v1 = vand.u32 2147483647, %v5005_v44  ;;  %vm2267_vm11 = vcmp.ge.f32.partialorder %v5005_v44, 0.0  ;;  %v2260_v44 = vmul.f32 0.5, %v5002_v43  ;;  %v3881_v43 = vld [vmem:[%s5202_s10 + $0x8] sm:$0xff]  }
0x169e   : > { %v2276_v46 = vand.u32 2147483647, %v5008_v45  ;;  %vm2268_vm12 = vcmp.ge.f32.partialorder %v5008_v45, 0.0 }
0x169f   : > { %v2279_v47 = vmul.f32 0.3275911, %v2275_v1  ;;  %v2331_v63 = vsub.f32 0.0, %v2275_v1  ;;  %v2272_v27 = vsel %vm2268_vm12, 1.0, %v4313_v56 }
0x16a0   : > { %v2280_v48 = vmul.f32 0.3275911, %v2276_v46  ;;  %v2332_v5 = vsub.f32 0.0, %v2276_v46 }
0x16a1   : > { %v2283_v50 = vadd.f32 1.0, %v2279_v47  ;;  %v2335_v9 = vmul.f32 %v2331_v63, %v2275_v1 }
0x16a2   : > { %v2284_v52 = vadd.f32 1.0, %v2280_v48  ;;  %v2336_v26 = vmul.f32 %v2332_v5, %v2276_v46 }
0x16a3   : > { %3930 = vrcp.f32 %v2283_v50  ;;  %v2341_v16 = vmul.f32 1.442695, %v2335_v9  ;;  %v2269_v50 = vsel %vm2265_vm9, 1.0, %v4313_v56  ;;  %v2271_v9 = vsel %vm2267_vm11, 1.0, %v4313_v56 }
0x16a4   : > { %3932 = vrcp.f32 %v2284_v52  ;;  %v2343_v28 = vmul.f32 1.442695, %v2336_v26  ;;  %v2259_v26 = vmul.f32 0.5, %v5000_v40  ;;  %v3880_v40 = vld [vmem:[%s5202_s10 + $0x48] sm:$0xff]  }
0x16a5   : > { %v3927_v53 = vpop.eup %3926  ;;  %3934 = vpow2.f32 %v2337_v20 }
0x16a6   : > { %v3929_v55 = vpop.eup %3928  ;;  %v2293_v57 = vmul.f32 1.0614054, %v3927_v53  ;;  %3936 = vpow2.f32 %v2339_v4 }
0x16a7   : > { %v2294_v60 = vmul.f32 1.0614054, %v3929_v55  ;;  %3938 = vpow2.f32 %v2341_v16  ;;  %v3878_v16 = vld [vmem:[%s5202_s10 + $0x40] sm:$0xff]  }
0x16a8   : > { %v2297_v61 = vadd.f32 -1.4531521, %v2293_v57  ;;  %3940 = vpow2.f32 %v2343_v28  ;;  %3469 = vmatprep.subr.bf16.mxu0 %v3878_v16  ;;  %v3884_v28 = vld [vmem:[%s5202_s10 + $0x58] sm:$0xff]  }
0x16a9   : > { %v2298_v62 = vadd.f32 -1.4531521, %v2294_v60 }
0x16aa   : > { %v2301_v2 = vmul.f32 %v3927_v53, %v2297_v61 }
0x16ab   : > { %v2302_v6 = vmul.f32 %v3929_v55, %v2298_v62 }
0x16ac   : > { %v2305_v0 = vadd.f32 1.4214138, %v2301_v2 }
0x16ad   : > { %v3931_v7 = vpop.eup %3930  ;;  %v2306_v8 = vadd.f32 1.4214138, %v2302_v6 }
0x16ae   : > { %v3933_v10 = vpop.eup %3932  ;;  %v2309_v25 = vmul.f32 %v3927_v53, %v2305_v0  ;;  %v2295_v17 = vmul.f32 1.0614054, %v3931_v7 }
0x16af   : > { %v2310_v23 = vmul.f32 %v3929_v55, %v2306_v8  ;;  %v2296_v11 = vmul.f32 1.0614054, %v3933_v10  ;;  %v3935_v58 = vpop.eup %3934 }
0x16b0   : > { %v2313_v12 = vadd.f32 -0.28449672, %v2309_v25  ;;  %v2299_v3 = vadd.f32 -1.4531521, %v2295_v17  ;;  %v3937_v32 = vpop.eup %3936 }
0x16b1   : > { %v2314_v13 = vadd.f32 -0.28449672, %v2310_v23  ;;  %v2300_v18 = vadd.f32 -1.4531521, %v2296_v11  ;;  %v3939_v20 = vpop.eup %3938 }
0x16b2   : > { %v2317_v21 = vmul.f32 %v3927_v53, %v2313_v12  ;;  %v2303_v24 = vmul.f32 %v3931_v7, %v2299_v3  ;;  %v3941_v2 = vpop.eup %3940 }
0x16b3   : > { %v2318_v30 = vmul.f32 %v3929_v55, %v2314_v13  ;;  %v2304_v33 = vmul.f32 %v3933_v10, %v2300_v18  ;;  %v3879_v18 = vld [vmem:[%s5202_s10] sm:$0xff]  }
0x16b4   : > { %v2321_v34 = vadd.f32 0.2548296, %v2317_v21  ;;  %v2307_v35 = vadd.f32 1.4214138, %v2303_v24  ;;  %v3882_v21 = vld [vmem:[%s5202_s10 + $0x50] sm:$0xff]  }
0x16b5   : > { %v2322_v36 = vadd.f32 0.2548296, %v2318_v30  ;;  %v2308_v37 = vadd.f32 1.4214138, %v2304_v33  ;;  %v3883_v24 = vld [vmem:[%s5202_s10 + $0x10] sm:$0xff]   ;;  %v3885_v30 = vld [vmem:[%s5202_s10 + $0x18] sm:$0xff]  }
0x16b6   : > { %v2325_v38 = vmul.f32 %v3927_v53, %v2321_v34  ;;  %v2311_v39 = vmul.f32 %v3931_v7, %v2307_v35  ;;  %v3886_v33 = vld [vmem:[%s5202_s10 + $0x60] sm:$0xff]   ;;  %v3888_v35 = vld [vmem:[%s5202_s10 + $0x68] sm:$0xff]  }
0x16b7   : > { %v2326_v41 = vmul.f32 %v3929_v55, %v2322_v36  ;;  %v2312_v42 = vmul.f32 %v3933_v10, %v2308_v37  ;;  %v3887_v34 = vld [vmem:[%s5202_s10 + $0x20] sm:$0xff]   ;;  %v3889_v36 = vld [vmem:[%s5202_s10 + $0x28] sm:$0xff]   ;;  %v3890_v37 = vld [vmem:[%s5202_s10 + $0x70] sm:$0xff]  }
0x16b8   : > { %v2345_v15 = vmul.f32 %v3935_v58, %v2325_v38  ;;  %v2315_v1 = vadd.f32 -0.28449672, %v2311_v39  ;;  %v3891_v38 = vld [vmem:[%s5202_s10 + $0x30] sm:$0xff]   ;;  %v3892_v39 = vld [vmem:[%s5202_s10 + $0x78] sm:$0xff]  }
0x16b9   : > { %v2346_v46 = vmul.f32 %v3937_v32, %v2326_v41  ;;  %v2316_v47 = vadd.f32 -0.28449672, %v2312_v42  ;;  %v3893_v58 = vld [vmem:[%s5202_s10 + $0x38] sm:$0xff]  }
0x16ba   : > { %v2349_v48 = vsub.f32 1.0, %v2345_v15  ;;  %v2319_v49 = vmul.f32 %v3931_v7, %v2315_v1  ;;  %v2433_v41 = vld [vmem:[#allocation16] sm:$0x3] }
0x16bb   : > { %v2350_v51 = vsub.f32 1.0, %v2346_v46  ;;  %v2320_v52 = vmul.f32 %v3933_v10, %v2316_v47  ;;  %v2758_v1 = vrot.slane %v2433_v41, %v4777_v19  ;;  %v2762_v47 = vrot.slane %v2433_v41, %v4818_v14 }
0x16bc   : > { %v2353_v53 = vmul.f32 %v2349_v48, %v2269_v50  ;;  %v2323_v55 = vadd.f32 0.2548296, %v2319_v49 }
0x16bd   : > { %v2354_v57 = vmul.f32 %v2350_v51, %v2270_v54  ;;  %v2324_v59 = vadd.f32 0.2548296, %v2320_v52 }
0x16be   : > { %v2357_v60 = vadd.f32 1.0, %v2353_v53  ;;  %v2327_v61 = vmul.f32 %v3931_v7, %v2323_v55 }
0x16bf   : > { %v2328_v62 = vmul.f32 %v3933_v10, %v2324_v59  ;;  %v2358_v63 = vadd.f32 1.0, %v2354_v57 }
0x16c0   : > { %v2361_v4 = vmul.f32 %v2357_v60, %v2257_v29  ;;  %v2347_v5 = vmul.f32 %v3939_v20, %v2327_v61 }
0x16c1   : > { %v2348_v6 = vmul.f32 %v3941_v2, %v2328_v62  ;;  %v2362_v0 = vmul.f32 %v2358_v63, %v2258_v31 }
0x16c2   : > { %v2351_v8 = vsub.f32 1.0, %v2347_v5  ;;  %v2365_v7 = vpack.c.bf16 %v2361_v4, %v2361_v4 }
0x16c3   : > { %v2352_v22 = vsub.f32 1.0, %v2348_v6  ;;  %v2366_v25 = vpack.c.bf16 %v2362_v0, %v2362_v0 }
0x16c4   : > { %v2355_v17 = vmul.f32 %v2351_v8, %v2271_v9 }
0x16c5   : > { %v2356_v10 = vmul.f32 %v2352_v22, %v2272_v27  ;;  %2797 = vmatprep.mubr.bf16.mxu0 %v2366_v25 }
0x16c6   : > { %v2359_v23 = vadd.f32 1.0, %v2355_v17  ;;  %2798 = vmatmul.mubr.bf16.vlgmr.msra.gmra.mrb[28].mxu0 %v2365_v7 }
0x16c7   : > { %v2360_v45 = vadd.f32 1.0, %v2356_v10  ;;  %3470 = vmatpush3.bf16.msra.mxu0 %v3879_v18 }
0x16c8   : > { %v2363_v11 = vmul.f32 %v2359_v23, %v2259_v26  ;;  %3471 = vmatprep.subr.bf16.mxu0 %v3880_v40 }
0x16c9   : > { %v2364_v12 = vmul.f32 %v2360_v45, %v2260_v44 }
0x16ca   : > { %v2367_v13 = vpack.c.bf16 %v2363_v11, %v2363_v11 }
0x16cb   : > { %v2368_v3 = vpack.c.bf16 %v2364_v12, %v2364_v12  ;;  %3472 = vmatpush3.bf16.msra.mxu0 %v3881_v43 }
0x16cc   : > { %3473 = vmatprep.subr.bf16.mxu0 %v3882_v21 }
0x16cd   : > { %2838 = vmatprep.mubr.bf16.mxu1 %v2368_v3 }
0x16ce   : > { %2839 = vmatmul.mubr.bf16.vlgmr.msra.gmra.mrb[32].mxu1 %v2367_v13 }
0x16cf   : > { %3474 = vmatpush3.bf16.msra.mxu0 %v3883_v24 }
0x16d0   : > { %3475 = vmatprep.subr.bf16.mxu0 %v3884_v28 }
0x16d3   : > { %3476 = vmatpush3.bf16.msra.mxu0 %v3885_v30 }
0x16d4   : > { %3477 = vmatprep.subr.bf16.mxu0 %v3886_v33 }
0x16d7   : > { %3478 = vmatpush3.bf16.msra.mxu0 %v3887_v34 }
0x16d8   : > { %3479 = vmatprep.subr.bf16.mxu0 %v3888_v35 }
0x16db   : > { %3480 = vmatpush3.bf16.msra.mxu0 %v3889_v36 }
0x16dc   : > { %3481 = vmatprep.subr.bf16.mxu0 %v3890_v37 }
0x16df   : > { %3482 = vmatpush3.bf16.msra.mxu0 %v3891_v38 }
0x16e0   : > { %3483 = vmatprep.subr.bf16.mxu0 %v3892_v39 }
0x16e3   : > { %3484 = vmatpush3.bf16.msra.mxu0 %v3893_v58 }
0x1799   : > { %v2799_v42 = vpop.f32.mrb[28].mxu0 }
0x179a   : > { %v2801_v32 = vpop.f32.mrb[29].mxu0  ;;  %v2800_v48 = vadd.f32 %v2799_v42, %v2758_v1 }
0x179b   : > { %v2803_v15 = vpop.f32.mrb[30].mxu0  ;;  %v2802_v49 = vadd.f32 %v2801_v32, %v2762_v47 }
0x179c   : > { %v2804_v46 = vpop.f32.mrb[31].mxu0 }
0x179d   : > { %v2935_v46 = vld [vmem:[%s5203_s30] sm:$0x1]  ;;  %s4212_s30 = sshll.u32 %s4315_s27, 4  ;;  %s4213_s30 = int_to_ptr.vmem [resolvable:$false] %s4212_s30 }
0x179e   : > { %s4214_s2 = scalar_lea.vmem %s4213_s30, 32  ;;  %p4215_p3 = scmp.lt.s32.totalorder %s5086_s3, %s4213_s30 }
0x179f   : > { %p4216_p7 = scmp.lt.s32.totalorder %s4214_s2, %s4208_s15 }
0x17a1   : > { %v2840_v50 = vpop.f32.mrb[32].mxu1  ;;  %p4217_p9 = por %p4216_p7, %p4215_p3 }
0x17a2   : > { %v2841_v51 = vadd.f32 %v2840_v50, %v2800_v48  ;;  %v2842_v52 = vpop.f32.mrb[33].mxu1 }
0x17a3   : > { %v2843_v53 = vadd.f32 %v2842_v52, %v2802_v49  ;;  %v2844_v54 = vpop.f32.mrb[34].mxu1  ;;  %p4218_p4 = pnand %p4217_p9, %p4211_p13 }
0x17a4   : > { %v2849_v55 = vmul.f32 0.70710677, %v2841_v51  ;;  %v2845_v57 = vpop.f32.mrb[35].mxu1  ;;  %v2847_v37 = vmul.f32 0.5, %v2841_v51 }
0x17a5   : > { %v2850_v59 = vmul.f32 0.70710677, %v2843_v53  ;;  %v2848_v39 = vmul.f32 0.5, %v2843_v53 }
0x17a6   : > { %v2855_v29 = vand.u32 2147483647, %v2849_v55  ;;  %vm2851_vm13 = vcmp.ge.f32.partialorder %v2849_v55, 0.0 }
0x17a7   : > { %v2856_v60 = vand.u32 2147483647, %v2850_v59  ;;  %vm2852_vm14 = vcmp.ge.f32.partialorder %v2850_v59, 0.0  ;;  %v2853_v30 = vsel %vm2851_vm13, 1.0, %v4313_v56 }
0x17a8   : > { %v2857_v61 = vmul.f32 0.3275911, %v2855_v29  ;;  %v2883_v19 = vsub.f32 0.0, %v2855_v29  ;;  %v2854_v35 = vsel %vm2852_vm14, 1.0, %v4313_v56 }
0x17a9   : > { %v2858_v20 = vmul.f32 0.3275911, %v2856_v60  ;;  %v2884_v14 = vsub.f32 0.0, %v2856_v60 }
0x17aa   : > { %v2859_v31 = vadd.f32 1.0, %v2857_v61  ;;  %v2885_v2 = vmul.f32 %v2883_v19, %v2855_v29 }
0x17ab   : > { %v2860_v62 = vadd.f32 1.0, %v2858_v20  ;;  %v2886_v6 = vmul.f32 %v2884_v14, %v2856_v60 }
0x17ac   : > { %3942 = vrcp.f32 %v2859_v31  ;;  %v2887_v9 = vmul.f32 1.442695, %v2885_v2 }
0x17ad   : > { %3944 = vrcp.f32 %v2860_v62  ;;  %v2889_v7 = vmul.f32 1.442695, %v2886_v6 }
0x17ae   : > { %3946 = vpow2.f32 %v2887_v9 }
0x17af   : > { %3948 = vpow2.f32 %v2889_v7 }
0x17b6   : > { %v3943_v63 = vpop.eup %3942 }
0x17b7   : > { %v3945_v4 = vpop.eup %3944  ;;  %v2865_v5 = vmul.f32 1.0614054, %v3943_v63 }
0x17b8   : > { %v2866_v0 = vmul.f32 1.0614054, %v3945_v4  ;;  %v3947_v18 = vpop.eup %3946 }
0x17b9   : > { %v2867_v8 = vadd.f32 -1.4531521, %v2865_v5  ;;  %v3949_v43 = vpop.eup %3948 }
0x17ba   : > { %v2868_v22 = vadd.f32 -1.4531521, %v2866_v0 }
0x17bb   : > { %v2869_v25 = vmul.f32 %v3943_v63, %v2867_v8 }
0x17bc   : > { %v2870_v17 = vmul.f32 %v3945_v4, %v2868_v22 }
0x17bd   : > { %v2871_v27 = vadd.f32 1.4214138, %v2869_v25 }
0x17be   : > { %v2872_v10 = vadd.f32 1.4214138, %v2870_v17 }
0x17bf   : > { %v2873_v26 = vmul.f32 %v3943_v63, %v2871_v27 }
0x17c0   : > { %v2874_v23 = vmul.f32 %v3945_v4, %v2872_v10 }
0x17c1   : > { %v2875_v44 = vadd.f32 -0.28449672, %v2873_v26 }
0x17c2   : > { %v2876_v45 = vadd.f32 -0.28449672, %v2874_v23 }
0x17c3   : > { %v2877_v11 = vmul.f32 %v3943_v63, %v2875_v44 }
0x17c4   : > { %v2878_v12 = vmul.f32 %v3945_v4, %v2876_v45 }
0x17c5   : > { %v2879_v3 = vadd.f32 0.2548296, %v2877_v11 }
0x17c6   : > { %v2880_v13 = vadd.f32 0.2548296, %v2878_v12 }
0x17c7   : > { %v2881_v16 = vmul.f32 %v3943_v63, %v2879_v3 }
0x17c8   : > { %v2882_v40 = vmul.f32 %v3945_v4, %v2880_v13 }
0x17c9   : > { %v2891_v21 = vmul.f32 %v3947_v18, %v2881_v16 }
0x17ca   : > { %v2892_v24 = vmul.f32 %v3949_v43, %v2882_v40 }
0x17cb   : > { %v2893_v28 = vsub.f32 1.0, %v2891_v21 }
0x17cc   : > { %v2894_v33 = vsub.f32 1.0, %v2892_v24 }
0x17cd   : > { %v2895_v34 = vmul.f32 %v2893_v28, %v2853_v30 }
0x17ce   : > { %v2896_v36 = vmul.f32 %v2894_v33, %v2854_v35 }
0x17cf   : > { %v2897_v38 = vadd.f32 1.0, %v2895_v34 }
0x17d0   : > { %v2898_v58 = vadd.f32 1.0, %v2896_v36 }
0x17d1   : > { %v2899_v41 = vmul.f32 %v2897_v38, %v2847_v37 }
0x17d2   : > { %v2900_v42 = vmul.f32 %v2898_v58, %v2848_v39 }
0x17d3   : > { %v2901_v15 = vpack.c.bf16 %v2899_v41, %v2899_v41 }
0x17d4   : > { %v2902_v32 = vpack.c.bf16 %v2900_v42, %v2900_v42 }
0x17d6   : > { %3064 = vmatprep.mubr.bf16.mxu0 %v2902_v32 }
0x17d7   : > { %3065 = vmatmul.mubr.bf16.vlgmr.msra.gmra.mrb[32].mxu0 %v2901_v15 }
0x18aa   : > { %v3485_v1 = vpop.f32.mrb[32].mxu0 }
0x18ab   : > { %v3486_v47 = vpop.f32.mrb[33].mxu0 }
0x18ac   : > { %v3487_v56 = vadd.f32 %v3486_v47, %v3485_v1  ;;  %v3488_v48 = vpop.f32.mrb[34].mxu0 }
0x18ad   : > { %v3489_v49 = vpop.f32.mrb[35].mxu0 }
0x18ae   : > { %v3067_v50 = vadd.f32 %v3487_v56, %v2935_v46 }
0x18b0   : > { %v3072_v51 = vsub.f32 0.0, %v3067_v50 }
0x18b2   : > { %v3073_v52 = vmul.f32 1.442695, %v3072_v51 }
0x18b4   : > { %3950 = vpow2.f32 %v3073_v52 }
0x18be   : > { %v3951_v53 = vpop.eup %3950 }
0x18bf   : > { %v3075_v54 = vadd.f32 1.0, %v3951_v53 }
0x18c1   : > { %3952 = vrcp.f32 %v3075_v54 }
0x18cb   : > { %v3953_v55 = vpop.eup %3952 }
0x18cc   : > { %3078 = vst [vmem:[%s671_s14] sm:$0x1] %v3953_v55 }
0x18cd   : > { %4221 = shalt.err (!%p4218_p4)
}
0x18ce   : > { %s4222_s4 = scalar_lea.hbm %s5084_s0, 16  ;;  %s4226_s1 = scalar_lea.hbm %s5204_s25, 32 }
0x18cf   : > { %p4223_p8 = scmp.ne.s32.totalorder %s5084_s0, %s4222_s4  ;;  %p4227_p6 = scmp.lt.u32.totalorder %s5084_s0, %s5204_s25 }
0x18d0   : > { %p4228_p5 = scmp.lt.u32.totalorder %s4226_s1, %s4222_s4  ;;  %p4230_p1 = scmp.lt.u32.totalorder %s4222_s4, %s5084_s0 }
0x18d1   : > { %p4224_p0 = pnand %p4223_p8, %p5205_p11 }
0x18d2   : > { %p4229_p10 = por %p4228_p5, %p4227_p6 }
0x18d3   : > { %p4225_p2 = pneg %p4224_p0 }
0x18d4   : > { %p4231_p12 = por %p4230_p1, %p4229_p10 }
0x18d6   : > { %p4232_p13 = pnand %p4231_p12, %p4225_p2 }
0x18d8   : > { %4235 = shalt.err (!%p4232_p13)
}
0x18d9   : > { %3641 = dma.vmem_to_hbm [thread:$0]  (%p5205_p11), %s5086_s3, 16, %s5084_s0, %s3080_s8  }
0x18da PF: > { %s3104_s2 = sand.u32 1, %s4278_s21   ;;  %p5206_p3 = scmp.ne.s32.totalorder %s5184_s18, 0 }
0x18db   : > { %p5207_p7 = scmp.ge.s32.totalorder %s4290_s24, 2  ;;  %s3105_s15 = scalar_lea.sflag [#allocation4], %s3104_s2 }
0x18dd   : > { %p3673_p9 = pnand %p5207_p7, %p5206_p3 }
0x18df   : > { %4273 = dma.done.wait (!%p3673_p9), %s3105_s15, 16  }
0x18e0   : > { %4275 = vsyncadd (!%p3673_p9), %s3105_s15, 4294967280  ;;  %p33_p4 = scmp.ge.s32.totalorder %s4638_s29, 4   ;;  %s5208_s21 = smov %s4282_s22 }
0x18e1   : > { %s5209_s22 = smov %s4286_s23  ;;  %s5210_s23 = smov %s4649_s9 }
0x18e2   : > { %s5211_s24 = smov %s4638_s29  ;;  %35 = sbr.rel (!%p33_p4) target bundleno = 21 (0x15), region = 174 }
0x18e9   :  { %3109 = vsyncpa [#allocation3], 1 }
0x18ea   :  { %3111 = vsyncpa [#allocation3 + $0x1], 1 }
0x18eb   :  { %3112 = vsyncpa [#allocation6], 1 }
0x18ec   :  { %3113 = vsyncpa [#allocation9], 1 }
0x18ed   :  { %3114 = vsyncpa [#allocation12], 1 }
0x18ee   :  { %3115 = vsyncpa [#allocation15], 1 }
0x18ef   :  { %3116 = vsyncpa [#allocation4], 1 }
0x18f0   :  { %3118 = vsyncpa [#allocation4 + $0x1], 1 }

</bundles_post_ra>
